<compile_context>
chip_gen: v7x
topology: tpu7x:2x2x1
jax: 0.10.0
libtpu: 0.0.40
codegen_flags: <defaults>
</compile_context>

<pallas_src>
import math
from functools import partial

import jax
import jax.numpy as jnp
from jax import lax
from jax.experimental import pallas as pl
from jax.experimental.pallas import tpu as pltpu

RMS_EPS = 1.1920929e-07   # torch.nn.RMSNorm default eps (finfo(float32).eps)
LN_EPS = 1e-5             # torch.nn.LayerNorm default eps
NEG_BIG = -1e30           # finite "minus infinity" (bf16/NaN-safe)


# ---------------------------------------------------------------------------
# in-kernel helpers
# ---------------------------------------------------------------------------
def _rmsnorm(x, w, eps=RMS_EPS):
    ms = jnp.mean(x * x, axis=-1, keepdims=True)
    return x * lax.rsqrt(ms + eps) * w


def _layernorm(x, g, b, eps=LN_EPS):
    mu = jnp.mean(x, axis=-1, keepdims=True)
    var = jnp.mean((x - mu) ** 2, axis=-1, keepdims=True)
    return (x - mu) * lax.rsqrt(var + eps) * g + b


def _exclusive_rowscan(s, n):
    """F[i] = sum_{j < i} s[j]  (== torch: roll rows down 1, zero row 0, cumsum).

    Hillis-Steele log-step scan: O(N^2 log N) VPU adds instead of the previous
    O(N^3) lower-triangular matmul.
    """
    if n == 1:
        return jnp.zeros((1, n), jnp.float32)
    f = jnp.concatenate([jnp.zeros((1, n), jnp.float32), s[: n - 1, :]], axis=0)
    d = 1
    while d < n:
        f = f + jnp.concatenate(
            [jnp.zeros((d, n), jnp.float32), f[: n - d, :]], axis=0)
        d *= 2
    return f


# ---------------------------------------------------------------------------
# Kernel 1: fused transformer layer
#   attention_norm -> selective MHA -> W_o -> +X -> ffn_norm -> SwiGLU -> +H
#   outputs: (layer_out, F_mask)
# ---------------------------------------------------------------------------
def layer_kernel(x_ref, wq_ref, wk_ref, wv_ref, wo_ref,
                 gq_ref, bq_ref, gk_ref, bk_ref, wan_ref,
                 wg_ref, w1_ref, w2_ref, wfn_ref,
                 out_ref, fmask_ref, *, num_heads, d_head, seq_len):
    n = seq_len
    x = x_ref[0]                                            # (N, D) f32
    xn = _rmsnorm(x, wan_ref[0]).astype(jnp.bfloat16)       # attention_norm

    # full-width projections (f32 accumulation), full-D LayerNorm, then bf16
    q = _layernorm(jnp.dot(xn, wq_ref[...], preferred_element_type=jnp.float32),
                   gq_ref[0], bq_ref[0]).astype(jnp.bfloat16)
    k = _layernorm(jnp.dot(xn, wk_ref[...], preferred_element_type=jnp.float32),
                   gk_ref[0], bk_ref[0]).astype(jnp.bfloat16)
    v = jnp.dot(xn, wv_ref[...],
                preferred_element_type=jnp.float32).astype(jnp.bfloat16)

    row = lax.broadcasted_iota(jnp.int32, (n, n), 0)
    col = lax.broadcasted_iota(jnp.int32, (n, n), 1)
    causal = row >= col
    scale = 1.0 / math.sqrt(d_head)

    def head_logits(h):
        qh = q[:, h * d_head:(h + 1) * d_head]
        kh = k[:, h * d_head:(h + 1) * d_head]
        lh = lax.dot_general(qh, kh, (((1,), (1,)), ((), ())),
                             preferred_element_type=jnp.float32) * scale
        return jnp.where(causal, lh, NEG_BIG)

    def attend(lh, h, f_mask):
        lh = lh - f_mask
        m = jnp.max(lh, axis=-1, keepdims=True)
        e = jnp.exp(lh - m)
        p = e * pl.reciprocal(jnp.sum(e, axis=-1, keepdims=True), approx=True)
        vh = v[:, h * d_head:(h + 1) * d_head]
        return jnp.dot(p.astype(jnp.bfloat16), vh,
                       preferred_element_type=jnp.float32)

    # --- selective masking score from head 0 (one (N,N) tile live at a time) ---
    l0 = head_logits(0)
    s = jnp.maximum(l0, 0.0)                   # relu (NEG_BIG -> 0)
    s = jnp.where(col == 0, 0.0, s)            # S[..., 0] = 0
    s = jnp.where(row == col, 0.0, s)          # (1 - eye(N)) * S
    f_mask = _exclusive_rowscan(s, n)          # roll-down-1 + zero row0 + cumsum
    fmask_ref[0] = f_mask

    # --- per-head softmax(logits - F) @ V, streamed one head at a time ---
    outs = [attend(l0, 0, f_mask)]
    for h in range(1, num_heads):
        outs.append(attend(head_logits(h), h, f_mask))
    o = jnp.concatenate(outs, axis=-1).astype(jnp.bfloat16)        # (N, D)
    h1 = jnp.dot(o, wo_ref[...], preferred_element_type=jnp.float32) + x

    # --- ffn_norm -> SwiGLU -> residual (fused, h1 never leaves VMEM) ---
    hn = _rmsnorm(h1, wfn_ref[0]).astype(jnp.bfloat16)
    g = jnp.dot(hn, wg_ref[...], preferred_element_type=jnp.float32)  # (N, Hd)
    a = jnp.dot(hn, w1_ref[...], preferred_element_type=jnp.float32)  # (N, Hd)
    sw = (g * jax.nn.sigmoid(g) * a).astype(jnp.bfloat16)             # SiLU gate
    out_ref[0] = jnp.dot(sw, w2_ref[...],
                         preferred_element_type=jnp.float32) + h1


# ---------------------------------------------------------------------------
# Kernel 2: final RMSNorm -> output projection (vocab-tiled)
# ---------------------------------------------------------------------------
def output_head_kernel(h_ref, wn_ref, wout_ref, out_ref):
    hn = _rmsnorm(h_ref[0], wn_ref[0]).astype(jnp.bfloat16)
    out_ref[0] = jnp.dot(hn, wout_ref[...], preferred_element_type=jnp.float32)


# ---------------------------------------------------------------------------
# wrappers
# ---------------------------------------------------------------------------
def _w2d(shape):
    return pl.BlockSpec(shape, lambda b: (0, 0))


def _vmem_limit(nbytes):
    # double-buffered inputs/outputs + headroom, clamped to a safe range
    est = 2 * nbytes + (8 << 20)
    return int(min(48 << 20, max(32 << 20, est)))


def transformer_layer(x, lp, num_heads):
    B, N, D = x.shape
    Hd = lp["wg_t"].shape[1]
    d_head = D // num_heads
    bf = jnp.bfloat16
    wq = lp["wq_t"].astype(bf); wk = lp["wk_t"].astype(bf)
    wv = lp["wv_t"].astype(bf); wo = lp["wo_t"].astype(bf)
    wg = lp["wg_t"].astype(bf); w1 = lp["w1_t"].astype(bf)
    w2 = lp["w2_t"].astype(bf)

    kernel = partial(layer_kernel, num_heads=num_heads,
                     d_head=d_head, seq_len=N)
    in_specs = [
        pl.BlockSpec((1, N, D), lambda b: (b, 0, 0)),
        _w2d((D, D)), _w2d((D, D)), _w2d((D, D)), _w2d((D, D)),
        _w2d((1, D)), _w2d((1, D)), _w2d((1, D)), _w2d((1, D)), _w2d((1, D)),
        _w2d((D, Hd)), _w2d((D, Hd)), _w2d((Hd, D)), _w2d((1, D)),
    ]
    out_specs = [pl.BlockSpec((1, N, D), lambda b: (b, 0, 0)),
                 pl.BlockSpec((1, N, N), lambda b: (b, 0, 0))]
    out_shape = [jax.ShapeDtypeStruct((B, N, D), jnp.float32),
                 jax.ShapeDtypeStruct((B, N, N), jnp.float32)]

    nbytes = (2 * N * D * 4 + N * N * 4            # x, layer_out, f_mask per step
              + 4 * D * D * 2 + 2 * D * Hd * 2 + Hd * D * 2   # bf16 weights
              + 6 * D * 4)                          # norm params
    # TODO(synk): flash-style q-tiling (grid over sequence with online softmax and a
    # carried F_mask row-sum) would further shrink VMEM for long N on v7x.
    return pl.pallas_call(
        kernel, grid=(B,), in_specs=in_specs, out_specs=out_specs,
        out_shape=out_shape,
        compiler_params=pltpu.CompilerParams(
            dimension_semantics=("parallel",),
            vmem_limit_bytes=_vmem_limit(nbytes)),
    )(x, wq, wk, wv, wo, lp["gq"], lp["bq"], lp["gk"], lp["bk"],
      lp["w_attn_norm"], wg, w1, w2, lp["w_ffn_norm"])


def _vocab_tile(V, max_tile=2048):
    cands = [c for c in range(128, min(V, max_tile) + 1, 128) if V % c == 0]
    return max(cands) if cands else V


def output_head(h, w_norm, w_out_t):
    B, N, D = h.shape
    V = w_out_t.shape[1]
    tv = _vocab_tile(V)
    nv = V // tv
    w_out_b = w_out_t.astype(jnp.bfloat16)

    in_specs = [
        pl.BlockSpec((1, N, D), lambda b, j: (b, 0, 0)),
        pl.BlockSpec((1, D), lambda b, j: (0, 0)),
        pl.BlockSpec((D, tv), lambda b, j: (0, j)),
    ]
    nbytes = N * D * 4 + D * tv * 2 + N * tv * 4 + D * 4
    return pl.pallas_call(
        output_head_kernel, grid=(B, nv), in_specs=in_specs,
        out_specs=pl.BlockSpec((1, N, tv), lambda b, j: (b, 0, j)),
        out_shape=jax.ShapeDtypeStruct((B, N, V), jnp.float32),
        compiler_params=pltpu.CompilerParams(
            dimension_semantics=("parallel", "parallel"),
            vmem_limit_bytes=_vmem_limit(nbytes)),
    )(h, w_norm, w_out_b)


def selective_transformer_forward(tokens, params, num_heads):
    # token embedding is a gather -> plain JAX glue
    h = params["embedding"][tokens]                    # (B, N, D)
    f_masks = []
    for lp in params["layers"]:
        h, f_mask = transformer_layer(h, lp, num_heads)  # attn + FFN fused
        f_masks.append(f_mask)
    logits = output_head(h, params["w_norm"], params["w_out_t"])
    return logits.astype(jnp.float32), f_masks


# ---------------------------------------------------------------------------
# deterministic parameter initialization (synthetic; matches module shapes)
# ---------------------------------------------------------------------------
def init_params(key, *, vocab_size, d_model, n_layers, n_heads):
    hidden = 4 * d_model
    keys = jax.random.split(key, 2 + n_layers)
    params = {
        "embedding": 0.02 * jax.random.normal(keys[0], (vocab_size, d_model), jnp.float32),
        "w_norm": jnp.ones((1, d_model), jnp.float32),
        # nn.Linear stores (out, in); we pass the transpose (in, out)
        "w_out_t": 0.02 * jax.random.normal(keys[1], (d_model, vocab_size), jnp.float32),
        "layers": [],
    }
    for li in range(n_layers):
        lk = jax.random.split(keys[2 + li], 8)
        lp = {
            "wq_t": 0.05 * jax.random.normal(lk[0], (d_model, d_model), jnp.float32),
            "wk_t": 0.05 * jax.random.normal(lk[1], (d_model, d_model), jnp.float32),
            "wv_t": 0.05 * jax.random.normal(lk[2], (d_model, d_model), jnp.float32),
            "wo_t": 0.05 * jax.random.normal(lk[3], (d_model, d_model), jnp.float32),
            "gq": jnp.ones((1, d_model), jnp.float32),
            "bq": jnp.zeros((1, d_model), jnp.float32),
            "gk": jnp.ones((1, d_model), jnp.float32),
            "bk": jnp.zeros((1, d_model), jnp.float32),
            "w_attn_norm": jnp.ones((1, d_model), jnp.float32),
            "w_ffn_norm": jnp.ones((1, d_model), jnp.float32),
            "wg_t": 0.05 * jax.random.normal(lk[4], (d_model, hidden), jnp.float32),
            "w1_t": 0.05 * jax.random.normal(lk[5], (d_model, hidden), jnp.float32),
            "w2_t": 0.05 * jax.random.normal(lk[6], (hidden, d_model), jnp.float32),
        }
        params["layers"].append(lp)
    return params


# TODO(synk): the use_pruning=True path (data-dependent KV-cache token pruning with a
# sequential Python scatter/gather loop) has no clean Pallas equivalent and is not
# implemented; the default forward (use_pruning=False) is fully covered.

if __name__ == "__main__":
    # small, self-consistent config
    VOCAB = 128
    D_MODEL = 32
    N_HEADS = 4
    N_LAYERS = 2
    BATCH = 2
    SEQ = 8

    key = jax.random.PRNGKey(0)
    pkey, tkey = jax.random.split(key)
    params = init_params(pkey, vocab_size=VOCAB, d_model=D_MODEL,
                         n_layers=N_LAYERS, n_heads=N_HEADS)
    tokens = jax.random.randint(tkey, (BATCH, SEQ), 0, VOCAB, dtype=jnp.int32)

    logits, f_masks = selective_transformer_forward(tokens, params, N_HEADS)
    jax.block_until_ready(logits)
    for fm in f_masks:
        jax.block_until_ready(fm)

    assert logits.shape == (BATCH, SEQ, VOCAB)
    assert all(fm.shape == (BATCH, SEQ, SEQ) for fm in f_masks)
    assert bool(jnp.all(jnp.isfinite(logits)))
    print("KERNEL_OK")
</pallas_src>

<mosaic_0001>
module attributes {stable_mosaic.version = 11 : i64} {
  func.func @layer_kernel(%arg0: i32, %arg1: memref<1x8x32xf32, #tpu.memory_space<vmem>>, %arg2: memref<32x32xbf16, #tpu.memory_space<vmem>>, %arg3: memref<32x32xbf16, #tpu.memory_space<vmem>>, %arg4: memref<32x32xbf16, #tpu.memory_space<vmem>>, %arg5: memref<32x32xbf16, #tpu.memory_space<vmem>>, %arg6: memref<1x32xf32, #tpu.memory_space<vmem>>, %arg7: memref<1x32xf32, #tpu.memory_space<vmem>>, %arg8: memref<1x32xf32, #tpu.memory_space<vmem>>, %arg9: memref<1x32xf32, #tpu.memory_space<vmem>>, %arg10: memref<1x32xf32, #tpu.memory_space<vmem>>, %arg11: memref<32x128xbf16, #tpu.memory_space<vmem>>, %arg12: memref<32x128xbf16, #tpu.memory_space<vmem>>, %arg13: memref<128x32xbf16, #tpu.memory_space<vmem>>, %arg14: memref<1x32xf32, #tpu.memory_space<vmem>>, %arg15: memref<1x8x32xf32, #tpu.memory_space<vmem>>, %arg16: memref<1x8x8xf32, #tpu.memory_space<vmem>>) attributes {dimension_semantics = [#tpu.dimension_semantics<parallel>], iteration_bounds = array<i64: 2>, scalar_prefetch = 0 : i64, scratch_operands = 0 : i64, tpu.core_type = #tpu.core_type<tc>, window_params = [{transform_indices = @transform_0, window_bounds = array<i64: 1, 8, 32>}, {pipeline_mode = #tpu.pipeline_mode<synchronous>, transform_indices = @transform_1, window_bounds = array<i64: 32, 32>}, {pipeline_mode = #tpu.pipeline_mode<synchronous>, transform_indices = @transform_2, window_bounds = array<i64: 32, 32>}, {pipeline_mode = #tpu.pipeline_mode<synchronous>, transform_indices = @transform_3, window_bounds = array<i64: 32, 32>}, {pipeline_mode = #tpu.pipeline_mode<synchronous>, transform_indices = @transform_4, window_bounds = array<i64: 32, 32>}, {pipeline_mode = #tpu.pipeline_mode<synchronous>, transform_indices = @transform_5, window_bounds = array<i64: 1, 32>}, {pipeline_mode = #tpu.pipeline_mode<synchronous>, transform_indices = @transform_6, window_bounds = array<i64: 1, 32>}, {pipeline_mode = #tpu.pipeline_mode<synchronous>, transform_indices = @transform_7, window_bounds = array<i64: 1, 32>}, {pipeline_mode = #tpu.pipeline_mode<synchronous>, transform_indices = @transform_8, window_bounds = array<i64: 1, 32>}, {pipeline_mode = #tpu.pipeline_mode<synchronous>, transform_indices = @transform_9, window_bounds = array<i64: 1, 32>}, {pipeline_mode = #tpu.pipeline_mode<synchronous>, transform_indices = @transform_10, window_bounds = array<i64: 32, 128>}, {pipeline_mode = #tpu.pipeline_mode<synchronous>, transform_indices = @transform_11, window_bounds = array<i64: 32, 128>}, {pipeline_mode = #tpu.pipeline_mode<synchronous>, transform_indices = @transform_12, window_bounds = array<i64: 128, 32>}, {pipeline_mode = #tpu.pipeline_mode<synchronous>, transform_indices = @transform_13, window_bounds = array<i64: 1, 32>}, {transform_indices = @transform_14, window_bounds = array<i64: 1, 8, 32>}, {transform_indices = @transform_15, window_bounds = array<i64: 1, 8, 8>}]} {
    %c0 = arith.constant 0 : index
    %c0_0 = arith.constant 0 : index
    %c0_1 = arith.constant 0 : index
    %0 = vector.load %arg1[%c0, %c0_0, %c0_1] : memref<1x8x32xf32, #tpu.memory_space<vmem>>, vector<1x8x32xf32>
    %1 = vector.shape_cast %0 : vector<1x8x32xf32> to vector<8x32xf32>
    %c0_2 = arith.constant 0 : index
    %c0_3 = arith.constant 0 : index
    %2 = vector.load %arg10[%c0_2, %c0_3] : memref<1x32xf32, #tpu.memory_space<vmem>>, vector<1x32xf32>
    %3 = vector.shape_cast %2 : vector<1x32xf32> to vector<32xf32>
    %4 = arith.mulf %1, %1 : vector<8x32xf32>
    %cst = arith.constant dense<0.000000e+00> : vector<8xf32>
    %5 = vector.multi_reduction <add>, %4, %cst [1] : vector<8x32xf32> to vector<8xf32>
    %6 = vector.shape_cast %5 : vector<8xf32> to vector<8x1xf32>
    %cst_4 = arith.constant 3.200000e+01 : f32
    %7 = vector.broadcast %cst_4 : f32 to vector<8x1xf32>
    %8 = arith.divf %6, %7 : vector<8x1xf32>
    %cst_5 = arith.constant 1.1920929E-7 : f32
    %9 = vector.broadcast %cst_5 : f32 to vector<8x1xf32>
    %10 = arith.addf %8, %9 : vector<8x1xf32>
    %11 = math.rsqrt %10 : vector<8x1xf32>
    %12 = vector.broadcast %11 : vector<8x1xf32> to vector<8x32xf32>
    %13 = arith.mulf %1, %12 : vector<8x32xf32>
    %14 = vector.shape_cast %3 : vector<32xf32> to vector<1x32xf32>
    %15 = vector.broadcast %14 : vector<1x32xf32> to vector<8x32xf32>
    %16 = arith.mulf %13, %15 : vector<8x32xf32>
    %17 = arith.truncf %16 : vector<8x32xf32> to vector<8x32xbf16>
    %c0_6 = arith.constant 0 : index
    %c0_7 = arith.constant 0 : index
    %18 = vector.load %arg2[%c0_6, %c0_7] : memref<32x32xbf16, #tpu.memory_space<vmem>>, vector<32x32xbf16>
    %cst_8 = arith.constant dense<0.000000e+00> : vector<8x32xf32>
    %19 = tpu.matmul %17, %18, %cst_8 {dimension_numbers = #tpu.dot_dimension_numbers<[1], [0], [0], [1], [0, 0, 1, 1], [], []>} : vector<8x32xbf16>, vector<32x32xbf16>, vector<8x32xf32> -> vector<8x32xf32>
    %c0_9 = arith.constant 0 : index
    %c0_10 = arith.constant 0 : index
    %20 = vector.load %arg6[%c0_9, %c0_10] : memref<1x32xf32, #tpu.memory_space<vmem>>, vector<1x32xf32>
    %21 = vector.shape_cast %20 : vector<1x32xf32> to vector<32xf32>
    %c0_11 = arith.constant 0 : index
    %c0_12 = arith.constant 0 : index
    %22 = vector.load %arg7[%c0_11, %c0_12] : memref<1x32xf32, #tpu.memory_space<vmem>>, vector<1x32xf32>
    %23 = vector.shape_cast %22 : vector<1x32xf32> to vector<32xf32>
    %cst_13 = arith.constant dense<0.000000e+00> : vector<8xf32>
    %24 = vector.multi_reduction <add>, %19, %cst_13 [1] : vector<8x32xf32> to vector<8xf32>
    %25 = vector.shape_cast %24 : vector<8xf32> to vector<8x1xf32>
    %cst_14 = arith.constant 3.200000e+01 : f32
    %26 = vector.broadcast %cst_14 : f32 to vector<8x1xf32>
    %27 = arith.divf %25, %26 : vector<8x1xf32>
    %28 = vector.broadcast %27 : vector<8x1xf32> to vector<8x32xf32>
    %29 = arith.subf %19, %28 : vector<8x32xf32>
    %30 = arith.mulf %29, %29 : vector<8x32xf32>
    %cst_15 = arith.constant dense<0.000000e+00> : vector<8xf32>
    %31 = vector.multi_reduction <add>, %30, %cst_15 [1] : vector<8x32xf32> to vector<8xf32>
    %32 = vector.shape_cast %31 : vector<8xf32> to vector<8x1xf32>
    %cst_16 = arith.constant 3.200000e+01 : f32
    %33 = vector.broadcast %cst_16 : f32 to vector<8x1xf32>
    %34 = arith.divf %32, %33 : vector<8x1xf32>
    %35 = vector.broadcast %27 : vector<8x1xf32> to vector<8x32xf32>
    %36 = arith.subf %19, %35 : vector<8x32xf32>
    %cst_17 = arith.constant 9.99999974E-6 : f32
    %37 = vector.broadcast %cst_17 : f32 to vector<8x1xf32>
    %38 = arith.addf %34, %37 : vector<8x1xf32>
    %39 = math.rsqrt %38 : vector<8x1xf32>
    %40 = vector.broadcast %39 : vector<8x1xf32> to vector<8x32xf32>
    %41 = arith.mulf %36, %40 : vector<8x32xf32>
    %42 = vector.shape_cast %21 : vector<32xf32> to vector<1x32xf32>
    %43 = vector.broadcast %42 : vector<1x32xf32> to vector<8x32xf32>
    %44 = arith.mulf %41, %43 : vector<8x32xf32>
    %45 = vector.shape_cast %23 : vector<32xf32> to vector<1x32xf32>
    %46 = vector.broadcast %45 : vector<1x32xf32> to vector<8x32xf32>
    %47 = arith.addf %44, %46 : vector<8x32xf32>
    %48 = arith.truncf %47 : vector<8x32xf32> to vector<8x32xbf16>
    %c0_18 = arith.constant 0 : index
    %c0_19 = arith.constant 0 : index
    %49 = vector.load %arg3[%c0_18, %c0_19] : memref<32x32xbf16, #tpu.memory_space<vmem>>, vector<32x32xbf16>
    %cst_20 = arith.constant dense<0.000000e+00> : vector<8x32xf32>
    %50 = tpu.matmul %17, %49, %cst_20 {dimension_numbers = #tpu.dot_dimension_numbers<[1], [0], [0], [1], [0, 0, 1, 1], [], []>} : vector<8x32xbf16>, vector<32x32xbf16>, vector<8x32xf32> -> vector<8x32xf32>
    %c0_21 = arith.constant 0 : index
    %c0_22 = arith.constant 0 : index
    %51 = vector.load %arg8[%c0_21, %c0_22] : memref<1x32xf32, #tpu.memory_space<vmem>>, vector<1x32xf32>
    %52 = vector.shape_cast %51 : vector<1x32xf32> to vector<32xf32>
    %c0_23 = arith.constant 0 : index
    %c0_24 = arith.constant 0 : index
    %53 = vector.load %arg9[%c0_23, %c0_24] : memref<1x32xf32, #tpu.memory_space<vmem>>, vector<1x32xf32>
    %54 = vector.shape_cast %53 : vector<1x32xf32> to vector<32xf32>
    %cst_25 = arith.constant dense<0.000000e+00> : vector<8xf32>
    %55 = vector.multi_reduction <add>, %50, %cst_25 [1] : vector<8x32xf32> to vector<8xf32>
    %56 = vector.shape_cast %55 : vector<8xf32> to vector<8x1xf32>
    %cst_26 = arith.constant 3.200000e+01 : f32
    %57 = vector.broadcast %cst_26 : f32 to vector<8x1xf32>
    %58 = arith.divf %56, %57 : vector<8x1xf32>
    %59 = vector.broadcast %58 : vector<8x1xf32> to vector<8x32xf32>
    %60 = arith.subf %50, %59 : vector<8x32xf32>
    %61 = arith.mulf %60, %60 : vector<8x32xf32>
    %cst_27 = arith.constant dense<0.000000e+00> : vector<8xf32>
    %62 = vector.multi_reduction <add>, %61, %cst_27 [1] : vector<8x32xf32> to vector<8xf32>
    %63 = vector.shape_cast %62 : vector<8xf32> to vector<8x1xf32>
    %cst_28 = arith.constant 3.200000e+01 : f32
    %64 = vector.broadcast %cst_28 : f32 to vector<8x1xf32>
    %65 = arith.divf %63, %64 : vector<8x1xf32>
    %66 = vector.broadcast %58 : vector<8x1xf32> to vector<8x32xf32>
    %67 = arith.subf %50, %66 : vector<8x32xf32>
    %cst_29 = arith.constant 9.99999974E-6 : f32
    %68 = vector.broadcast %cst_29 : f32 to vector<8x1xf32>
    %69 = arith.addf %65, %68 : vector<8x1xf32>
    %70 = math.rsqrt %69 : vector<8x1xf32>
    %71 = vector.broadcast %70 : vector<8x1xf32> to vector<8x32xf32>
    %72 = arith.mulf %67, %71 : vector<8x32xf32>
    %73 = vector.shape_cast %52 : vector<32xf32> to vector<1x32xf32>
    %74 = vector.broadcast %73 : vector<1x32xf32> to vector<8x32xf32>
    %75 = arith.mulf %72, %74 : vector<8x32xf32>
    %76 = vector.shape_cast %54 : vector<32xf32> to vector<1x32xf32>
    %77 = vector.broadcast %76 : vector<1x32xf32> to vector<8x32xf32>
    %78 = arith.addf %75, %77 : vector<8x32xf32>
    %79 = arith.truncf %78 : vector<8x32xf32> to vector<8x32xbf16>
    %c0_30 = arith.constant 0 : index
    %c0_31 = arith.constant 0 : index
    %80 = vector.load %arg4[%c0_30, %c0_31] : memref<32x32xbf16, #tpu.memory_space<vmem>>, vector<32x32xbf16>
    %cst_32 = arith.constant dense<0.000000e+00> : vector<8x32xf32>
    %81 = tpu.matmul %17, %80, %cst_32 {dimension_numbers = #tpu.dot_dimension_numbers<[1], [0], [0], [1], [0, 0, 1, 1], [], []>} : vector<8x32xbf16>, vector<32x32xbf16>, vector<8x32xf32> -> vector<8x32xf32>
    %82 = arith.truncf %81 : vector<8x32xf32> to vector<8x32xbf16>
    %83 = tpu.iota {dimensions = array<i32: 0>} : vector<8x8xi32>
    %84 = tpu.iota {dimensions = array<i32: 1>} : vector<8x8xi32>
    %85 = arith.cmpi sge, %83, %84 : vector<8x8xi32>
    %86 = vector.extract_strided_slice %48 {offsets = [0, 0], sizes = [8, 8], strides = [1, 1]} : vector<8x32xbf16> to vector<8x8xbf16>
    %87 = vector.extract_strided_slice %79 {offsets = [0, 0], sizes = [8, 8], strides = [1, 1]} : vector<8x32xbf16> to vector<8x8xbf16>
    %cst_33 = arith.constant dense<0.000000e+00> : vector<8x8xf32>
    %88 = tpu.matmul %86, %87, %cst_33 {dimension_numbers = #tpu.dot_dimension_numbers<[1], [1], [0], [0], [0, 0, 1, 0], [], []>} : vector<8x8xbf16>, vector<8x8xbf16>, vector<8x8xf32> -> vector<8x8xf32>
    %cst_34 = arith.constant 0.353553385 : f32
    %89 = vector.broadcast %cst_34 : f32 to vector<8x8xf32>
    %90 = arith.mulf %88, %89 : vector<8x8xf32>
    %cst_35 = arith.constant -1.000000e+30 : f32
    %91 = vector.broadcast %cst_35 : f32 to vector<8x8xf32>
    %92 = arith.select %85, %90, %91 : vector<8x8xi1>, vector<8x8xf32>
    %cst_36 = arith.constant 0.000000e+00 : f32
    %93 = vector.broadcast %cst_36 : f32 to vector<8x8xf32>
    %94 = arith.maximumf %92, %93 : vector<8x8xf32>
    %c0_i32 = arith.constant 0 : i32
    %95 = vector.broadcast %c0_i32 : i32 to vector<8x8xi32>
    %96 = arith.cmpi eq, %84, %95 : vector<8x8xi32>
    %cst_37 = arith.constant 0.000000e+00 : f32
    %97 = vector.broadcast %cst_37 : f32 to vector<8x8xf32>
    %98 = arith.select %96, %97, %94 : vector<8x8xi1>, vector<8x8xf32>
    %99 = arith.cmpi eq, %83, %84 : vector<8x8xi32>
    %cst_38 = arith.constant 0.000000e+00 : f32
    %100 = vector.broadcast %cst_38 : f32 to vector<8x8xf32>
    %101 = arith.select %99, %100, %98 : vector<8x8xi1>, vector<8x8xf32>
    %cst_39 = arith.constant 0.000000e+00 : f32
    %102 = vector.broadcast %cst_39 : f32 to vector<1x8xf32>
    %103 = vector.extract_strided_slice %101 {offsets = [0, 0], sizes = [7, 8], strides = [1, 1]} : vector<8x8xf32> to vector<7x8xf32>
    %104 = tpu.concatenate %102, %103 in 0 : vector<1x8xf32>, vector<7x8xf32> -> vector<8x8xf32>
    %cst_40 = arith.constant 0.000000e+00 : f32
    %105 = vector.broadcast %cst_40 : f32 to vector<1x8xf32>
    %106 = vector.extract_strided_slice %104 {offsets = [0, 0], sizes = [7, 8], strides = [1, 1]} : vector<8x8xf32> to vector<7x8xf32>
    %107 = tpu.concatenate %105, %106 in 0 : vector<1x8xf32>, vector<7x8xf32> -> vector<8x8xf32>
    %108 = arith.addf %104, %107 : vector<8x8xf32>
    %cst_41 = arith.constant 0.000000e+00 : f32
    %109 = vector.broadcast %cst_41 : f32 to vector<2x8xf32>
    %110 = vector.extract_strided_slice %108 {offsets = [0, 0], sizes = [6, 8], strides = [1, 1]} : vector<8x8xf32> to vector<6x8xf32>
    %111 = tpu.concatenate %109, %110 in 0 : vector<2x8xf32>, vector<6x8xf32> -> vector<8x8xf32>
    %112 = arith.addf %108, %111 : vector<8x8xf32>
    %cst_42 = arith.constant 0.000000e+00 : f32
    %113 = vector.broadcast %cst_42 : f32 to vector<4x8xf32>
    %114 = vector.extract_strided_slice %112 {offsets = [0, 0], sizes = [4, 8], strides = [1, 1]} : vector<8x8xf32> to vector<4x8xf32>
    %115 = tpu.concatenate %113, %114 in 0 : vector<4x8xf32>, vector<4x8xf32> -> vector<8x8xf32>
    %116 = arith.addf %112, %115 : vector<8x8xf32>
    %c0_43 = arith.constant 0 : index
    %c0_44 = arith.constant 0 : index
    %c0_45 = arith.constant 0 : index
    %117 = vector.load %arg16[%c0_43, %c0_44, %c0_45] : memref<1x8x8xf32, #tpu.memory_space<vmem>>, vector<1x8x8xf32>
    %118 = vector.shape_cast %117 : vector<1x8x8xf32> to vector<8x8xf32>
    %119 = vector.shape_cast %116 : vector<8x8xf32> to vector<1x8x8xf32>
    tpu.vector_store %arg16[%c0_43, %c0_44, %c0_45], %119 {strides = array<i32>} : memref<1x8x8xf32, #tpu.memory_space<vmem>>, vector<1x8x8xf32>,
    %120 = arith.subf %92, %116 : vector<8x8xf32>
    %cst_46 = arith.constant dense<0xFF800000> : vector<8xf32>
    %121 = vector.multi_reduction <maximumf>, %120, %cst_46 [1] : vector<8x8xf32> to vector<8xf32>
    %122 = vector.shape_cast %121 : vector<8xf32> to vector<8x1xf32>
    %123 = vector.broadcast %122 : vector<8x1xf32> to vector<8x8xf32>
    %124 = arith.subf %120, %123 : vector<8x8xf32>
    %125 = math.exp %124 : vector<8x8xf32>
    %cst_47 = arith.constant dense<0.000000e+00> : vector<8xf32>
    %126 = vector.multi_reduction <add>, %125, %cst_47 [1] : vector<8x8xf32> to vector<8xf32>
    %127 = vector.shape_cast %126 : vector<8xf32> to vector<8x1xf32>
    %128 = tpu.reciprocal %127 {approx = true} : vector<8x1xf32> -> vector<8x1xf32>
    %129 = vector.broadcast %128 : vector<8x1xf32> to vector<8x8xf32>
    %130 = arith.mulf %125, %129 : vector<8x8xf32>
    %131 = vector.extract_strided_slice %82 {offsets = [0, 0], sizes = [8, 8], strides = [1, 1]} : vector<8x32xbf16> to vector<8x8xbf16>
    %132 = arith.truncf %130 : vector<8x8xf32> to vector<8x8xbf16>
    %cst_48 = arith.constant dense<0.000000e+00> : vector<8x8xf32>
    %133 = tpu.matmul %132, %131, %cst_48 {dimension_numbers = #tpu.dot_dimension_numbers<[1], [0], [0], [1], [0, 0, 1, 1], [], []>} : vector<8x8xbf16>, vector<8x8xbf16>, vector<8x8xf32> -> vector<8x8xf32>
    %134 = vector.extract_strided_slice %48 {offsets = [0, 8], sizes = [8, 8], strides = [1, 1]} : vector<8x32xbf16> to vector<8x8xbf16>
    %135 = vector.extract_strided_slice %79 {offsets = [0, 8], sizes = [8, 8], strides = [1, 1]} : vector<8x32xbf16> to vector<8x8xbf16>
    %cst_49 = arith.constant dense<0.000000e+00> : vector<8x8xf32>
    %136 = tpu.matmul %134, %135, %cst_49 {dimension_numbers = #tpu.dot_dimension_numbers<[1], [1], [0], [0], [0, 0, 1, 0], [], []>} : vector<8x8xbf16>, vector<8x8xbf16>, vector<8x8xf32> -> vector<8x8xf32>
    %cst_50 = arith.constant 0.353553385 : f32
    %137 = vector.broadcast %cst_50 : f32 to vector<8x8xf32>
    %138 = arith.mulf %136, %137 : vector<8x8xf32>
    %cst_51 = arith.constant -1.000000e+30 : f32
    %139 = vector.broadcast %cst_51 : f32 to vector<8x8xf32>
    %140 = arith.select %85, %138, %139 : vector<8x8xi1>, vector<8x8xf32>
    %141 = arith.subf %140, %116 : vector<8x8xf32>
    %cst_52 = arith.constant dense<0xFF800000> : vector<8xf32>
    %142 = vector.multi_reduction <maximumf>, %141, %cst_52 [1] : vector<8x8xf32> to vector<8xf32>
    %143 = vector.shape_cast %142 : vector<8xf32> to vector<8x1xf32>
    %144 = vector.broadcast %143 : vector<8x1xf32> to vector<8x8xf32>
    %145 = arith.subf %141, %144 : vector<8x8xf32>
    %146 = math.exp %145 : vector<8x8xf32>
    %cst_53 = arith.constant dense<0.000000e+00> : vector<8xf32>
    %147 = vector.multi_reduction <add>, %146, %cst_53 [1] : vector<8x8xf32> to vector<8xf32>
    %148 = vector.shape_cast %147 : vector<8xf32> to vector<8x1xf32>
    %149 = tpu.reciprocal %148 {approx = true} : vector<8x1xf32> -> vector<8x1xf32>
    %150 = vector.broadcast %149 : vector<8x1xf32> to vector<8x8xf32>
    %151 = arith.mulf %146, %150 : vector<8x8xf32>
    %152 = vector.extract_strided_slice %82 {offsets = [0, 8], sizes = [8, 8], strides = [1, 1]} : vector<8x32xbf16> to vector<8x8xbf16>
    %153 = arith.truncf %151 : vector<8x8xf32> to vector<8x8xbf16>
    %cst_54 = arith.constant dense<0.000000e+00> : vector<8x8xf32>
    %154 = tpu.matmul %153, %152, %cst_54 {dimension_numbers = #tpu.dot_dimension_numbers<[1], [0], [0], [1], [0, 0, 1, 1], [], []>} : vector<8x8xbf16>, vector<8x8xbf16>, vector<8x8xf32> -> vector<8x8xf32>
    %155 = vector.extract_strided_slice %48 {offsets = [0, 16], sizes = [8, 8], strides = [1, 1]} : vector<8x32xbf16> to vector<8x8xbf16>
    %156 = vector.extract_strided_slice %79 {offsets = [0, 16], sizes = [8, 8], strides = [1, 1]} : vector<8x32xbf16> to vector<8x8xbf16>
    %cst_55 = arith.constant dense<0.000000e+00> : vector<8x8xf32>
    %157 = tpu.matmul %155, %156, %cst_55 {dimension_numbers = #tpu.dot_dimension_numbers<[1], [1], [0], [0], [0, 0, 1, 0], [], []>} : vector<8x8xbf16>, vector<8x8xbf16>, vector<8x8xf32> -> vector<8x8xf32>
    %cst_56 = arith.constant 0.353553385 : f32
    %158 = vector.broadcast %cst_56 : f32 to vector<8x8xf32>
    %159 = arith.mulf %157, %158 : vector<8x8xf32>
    %cst_57 = arith.constant -1.000000e+30 : f32
    %160 = vector.broadcast %cst_57 : f32 to vector<8x8xf32>
    %161 = arith.select %85, %159, %160 : vector<8x8xi1>, vector<8x8xf32>
    %162 = arith.subf %161, %116 : vector<8x8xf32>
    %cst_58 = arith.constant dense<0xFF800000> : vector<8xf32>
    %163 = vector.multi_reduction <maximumf>, %162, %cst_58 [1] : vector<8x8xf32> to vector<8xf32>
    %164 = vector.shape_cast %163 : vector<8xf32> to vector<8x1xf32>
    %165 = vector.broadcast %164 : vector<8x1xf32> to vector<8x8xf32>
    %166 = arith.subf %162, %165 : vector<8x8xf32>
    %167 = math.exp %166 : vector<8x8xf32>
    %cst_59 = arith.constant dense<0.000000e+00> : vector<8xf32>
    %168 = vector.multi_reduction <add>, %167, %cst_59 [1] : vector<8x8xf32> to vector<8xf32>
    %169 = vector.shape_cast %168 : vector<8xf32> to vector<8x1xf32>
    %170 = tpu.reciprocal %169 {approx = true} : vector<8x1xf32> -> vector<8x1xf32>
    %171 = vector.broadcast %170 : vector<8x1xf32> to vector<8x8xf32>
    %172 = arith.mulf %167, %171 : vector<8x8xf32>
    %173 = vector.extract_strided_slice %82 {offsets = [0, 16], sizes = [8, 8], strides = [1, 1]} : vector<8x32xbf16> to vector<8x8xbf16>
    %174 = arith.truncf %172 : vector<8x8xf32> to vector<8x8xbf16>
    %cst_60 = arith.constant dense<0.000000e+00> : vector<8x8xf32>
    %175 = tpu.matmul %174, %173, %cst_60 {dimension_numbers = #tpu.dot_dimension_numbers<[1], [0], [0], [1], [0, 0, 1, 1], [], []>} : vector<8x8xbf16>, vector<8x8xbf16>, vector<8x8xf32> -> vector<8x8xf32>
    %176 = vector.extract_strided_slice %48 {offsets = [0, 24], sizes = [8, 8], strides = [1, 1]} : vector<8x32xbf16> to vector<8x8xbf16>
    %177 = vector.extract_strided_slice %79 {offsets = [0, 24], sizes = [8, 8], strides = [1, 1]} : vector<8x32xbf16> to vector<8x8xbf16>
    %cst_61 = arith.constant dense<0.000000e+00> : vector<8x8xf32>
    %178 = tpu.matmul %176, %177, %cst_61 {dimension_numbers = #tpu.dot_dimension_numbers<[1], [1], [0], [0], [0, 0, 1, 0], [], []>} : vector<8x8xbf16>, vector<8x8xbf16>, vector<8x8xf32> -> vector<8x8xf32>
    %cst_62 = arith.constant 0.353553385 : f32
    %179 = vector.broadcast %cst_62 : f32 to vector<8x8xf32>
    %180 = arith.mulf %178, %179 : vector<8x8xf32>
    %cst_63 = arith.constant -1.000000e+30 : f32
    %181 = vector.broadcast %cst_63 : f32 to vector<8x8xf32>
    %182 = arith.select %85, %180, %181 : vector<8x8xi1>, vector<8x8xf32>
    %183 = arith.subf %182, %116 : vector<8x8xf32>
    %cst_64 = arith.constant dense<0xFF800000> : vector<8xf32>
    %184 = vector.multi_reduction <maximumf>, %183, %cst_64 [1] : vector<8x8xf32> to vector<8xf32>
    %185 = vector.shape_cast %184 : vector<8xf32> to vector<8x1xf32>
    %186 = vector.broadcast %185 : vector<8x1xf32> to vector<8x8xf32>
    %187 = arith.subf %183, %186 : vector<8x8xf32>
    %188 = math.exp %187 : vector<8x8xf32>
    %cst_65 = arith.constant dense<0.000000e+00> : vector<8xf32>
    %189 = vector.multi_reduction <add>, %188, %cst_65 [1] : vector<8x8xf32> to vector<8xf32>
    %190 = vector.shape_cast %189 : vector<8xf32> to vector<8x1xf32>
    %191 = tpu.reciprocal %190 {approx = true} : vector<8x1xf32> -> vector<8x1xf32>
    %192 = vector.broadcast %191 : vector<8x1xf32> to vector<8x8xf32>
    %193 = arith.mulf %188, %192 : vector<8x8xf32>
    %194 = vector.extract_strided_slice %82 {offsets = [0, 24], sizes = [8, 8], strides = [1, 1]} : vector<8x32xbf16> to vector<8x8xbf16>
    %195 = arith.truncf %193 : vector<8x8xf32> to vector<8x8xbf16>
    %cst_66 = arith.constant dense<0.000000e+00> : vector<8x8xf32>
    %196 = tpu.matmul %195, %194, %cst_66 {dimension_numbers = #tpu.dot_dimension_numbers<[1], [0], [0], [1], [0, 0, 1, 1], [], []>} : vector<8x8xbf16>, vector<8x8xbf16>, vector<8x8xf32> -> vector<8x8xf32>
    %197 = tpu.concatenate %133, %154, %175, %196 in 1 : vector<8x8xf32>, vector<8x8xf32>, vector<8x8xf32>, vector<8x8xf32> -> vector<8x32xf32>
    %198 = arith.truncf %197 : vector<8x32xf32> to vector<8x32xbf16>
    %c0_67 = arith.constant 0 : index
    %c0_68 = arith.constant 0 : index
    %199 = vector.load %arg5[%c0_67, %c0_68] : memref<32x32xbf16, #tpu.memory_space<vmem>>, vector<32x32xbf16>
    %cst_69 = arith.constant dense<0.000000e+00> : vector<8x32xf32>
    %200 = tpu.matmul %198, %199, %cst_69 {dimension_numbers = #tpu.dot_dimension_numbers<[1], [0], [0], [1], [0, 0, 1, 1], [], []>} : vector<8x32xbf16>, vector<32x32xbf16>, vector<8x32xf32> -> vector<8x32xf32>
    %201 = arith.addf %200, %1 : vector<8x32xf32>
    %c0_70 = arith.constant 0 : index
    %c0_71 = arith.constant 0 : index
    %202 = vector.load %arg14[%c0_70, %c0_71] : memref<1x32xf32, #tpu.memory_space<vmem>>, vector<1x32xf32>
    %203 = vector.shape_cast %202 : vector<1x32xf32> to vector<32xf32>
    %204 = arith.mulf %201, %201 : vector<8x32xf32>
    %cst_72 = arith.constant dense<0.000000e+00> : vector<8xf32>
    %205 = vector.multi_reduction <add>, %204, %cst_72 [1] : vector<8x32xf32> to vector<8xf32>
    %206 = vector.shape_cast %205 : vector<8xf32> to vector<8x1xf32>
    %cst_73 = arith.constant 3.200000e+01 : f32
    %207 = vector.broadcast %cst_73 : f32 to vector<8x1xf32>
    %208 = arith.divf %206, %207 : vector<8x1xf32>
    %cst_74 = arith.constant 1.1920929E-7 : f32
    %209 = vector.broadcast %cst_74 : f32 to vector<8x1xf32>
    %210 = arith.addf %208, %209 : vector<8x1xf32>
    %211 = math.rsqrt %210 : vector<8x1xf32>
    %212 = vector.broadcast %211 : vector<8x1xf32> to vector<8x32xf32>
    %213 = arith.mulf %201, %212 : vector<8x32xf32>
    %214 = vector.shape_cast %203 : vector<32xf32> to vector<1x32xf32>
    %215 = vector.broadcast %214 : vector<1x32xf32> to vector<8x32xf32>
    %216 = arith.mulf %213, %215 : vector<8x32xf32>
    %217 = arith.truncf %216 : vector<8x32xf32> to vector<8x32xbf16>
    %c0_75 = arith.constant 0 : index
    %c0_76 = arith.constant 0 : index
    %218 = vector.load %arg11[%c0_75, %c0_76] : memref<32x128xbf16, #tpu.memory_space<vmem>>, vector<32x128xbf16>
    %cst_77 = arith.constant dense<0.000000e+00> : vector<8x128xf32>
    %219 = tpu.matmul %217, %218, %cst_77 {dimension_numbers = #tpu.dot_dimension_numbers<[1], [0], [0], [1], [0, 0, 1, 1], [], []>} : vector<8x32xbf16>, vector<32x128xbf16>, vector<8x128xf32> -> vector<8x128xf32>
    %c0_78 = arith.constant 0 : index
    %c0_79 = arith.constant 0 : index
    %220 = vector.load %arg12[%c0_78, %c0_79] : memref<32x128xbf16, #tpu.memory_space<vmem>>, vector<32x128xbf16>
    %cst_80 = arith.constant dense<0.000000e+00> : vector<8x128xf32>
    %221 = tpu.matmul %217, %220, %cst_80 {dimension_numbers = #tpu.dot_dimension_numbers<[1], [0], [0], [1], [0, 0, 1, 1], [], []>} : vector<8x32xbf16>, vector<32x128xbf16>, vector<8x128xf32> -> vector<8x128xf32>
    %222 = arith.negf %219 : vector<8x128xf32>
    %223 = math.exp %222 : vector<8x128xf32>
    %cst_81 = arith.constant 1.000000e+00 : f32
    %224 = vector.broadcast %cst_81 : f32 to vector<8x128xf32>
    %225 = arith.addf %224, %223 : vector<8x128xf32>
    %226 = arith.divf %224, %225 : vector<8x128xf32>
    %227 = arith.mulf %219, %226 : vector<8x128xf32>
    %228 = arith.mulf %227, %221 : vector<8x128xf32>
    %229 = arith.truncf %228 : vector<8x128xf32> to vector<8x128xbf16>
    %c0_82 = arith.constant 0 : index
    %c0_83 = arith.constant 0 : index
    %230 = vector.load %arg13[%c0_82, %c0_83] : memref<128x32xbf16, #tpu.memory_space<vmem>>, vector<128x32xbf16>
    %cst_84 = arith.constant dense<0.000000e+00> : vector<8x32xf32>
    %231 = tpu.matmul %229, %230, %cst_84 {dimension_numbers = #tpu.dot_dimension_numbers<[1], [0], [0], [1], [0, 0, 1, 1], [], []>} : vector<8x128xbf16>, vector<128x32xbf16>, vector<8x32xf32> -> vector<8x32xf32>
    %232 = arith.addf %231, %201 : vector<8x32xf32>
    %c0_85 = arith.constant 0 : index
    %c0_86 = arith.constant 0 : index
    %c0_87 = arith.constant 0 : index
    %233 = vector.load %arg15[%c0_85, %c0_86, %c0_87] : memref<1x8x32xf32, #tpu.memory_space<vmem>>, vector<1x8x32xf32>
    %234 = vector.shape_cast %233 : vector<1x8x32xf32> to vector<8x32xf32>
    %235 = vector.shape_cast %232 : vector<8x32xf32> to vector<1x8x32xf32>
    tpu.vector_store %arg15[%c0_85, %c0_86, %c0_87], %235 {strides = array<i32>} : memref<1x8x32xf32, #tpu.memory_space<vmem>>, vector<1x8x32xf32>,
    return
  }
  func.func @transform_0(%arg0: i32) -> (i32, i32, i32) {
    %c0_i32 = arith.constant 0 : i32
    %c0_i32_0 = arith.constant 0 : i32
    %c0_i32_1 = arith.constant 0 : i32
    return %arg0, %c0_i32, %c0_i32_0 : i32, i32, i32
  }
  func.func @transform_1(%arg0: i32) -> (i32, i32) {
    %c0_i32 = arith.constant 0 : i32
    %c0_i32_0 = arith.constant 0 : i32
    %c0_i32_1 = arith.constant 0 : i32
    return %c0_i32, %c0_i32_0 : i32, i32
  }
  func.func @transform_2(%arg0: i32) -> (i32, i32) {
    %c0_i32 = arith.constant 0 : i32
    %c0_i32_0 = arith.constant 0 : i32
    %c0_i32_1 = arith.constant 0 : i32
    return %c0_i32, %c0_i32_0 : i32, i32
  }
  func.func @transform_3(%arg0: i32) -> (i32, i32) {
    %c0_i32 = arith.constant 0 : i32
    %c0_i32_0 = arith.constant 0 : i32
    %c0_i32_1 = arith.constant 0 : i32
    return %c0_i32, %c0_i32_0 : i32, i32
  }
  func.func @transform_4(%arg0: i32) -> (i32, i32) {
    %c0_i32 = arith.constant 0 : i32
    %c0_i32_0 = arith.constant 0 : i32
    %c0_i32_1 = arith.constant 0 : i32
    return %c0_i32, %c0_i32_0 : i32, i32
  }
  func.func @transform_5(%arg0: i32) -> (i32, i32) {
    %c0_i32 = arith.constant 0 : i32
    %c0_i32_0 = arith.constant 0 : i32
    %c0_i32_1 = arith.constant 0 : i32
    return %c0_i32, %c0_i32_0 : i32, i32
  }
  func.func @transform_6(%arg0: i32) -> (i32, i32) {
    %c0_i32 = arith.constant 0 : i32
    %c0_i32_0 = arith.constant 0 : i32
    %c0_i32_1 = arith.constant 0 : i32
    return %c0_i32, %c0_i32_0 : i32, i32
  }
  func.func @transform_7(%arg0: i32) -> (i32, i32) {
    %c0_i32 = arith.constant 0 : i32
    %c0_i32_0 = arith.constant 0 : i32
    %c0_i32_1 = arith.constant 0 : i32
    return %c0_i32, %c0_i32_0 : i32, i32
  }
  func.func @transform_8(%arg0: i32) -> (i32, i32) {
    %c0_i32 = arith.constant 0 : i32
    %c0_i32_0 = arith.constant 0 : i32
    %c0_i32_1 = arith.constant 0 : i32
    return %c0_i32, %c0_i32_0 : i32, i32
  }
  func.func @transform_9(%arg0: i32) -> (i32, i32) {
    %c0_i32 = arith.constant 0 : i32
    %c0_i32_0 = arith.constant 0 : i32
    %c0_i32_1 = arith.constant 0 : i32
    return %c0_i32, %c0_i32_0 : i32, i32
  }
  func.func @transform_10(%arg0: i32) -> (i32, i32) {
    %c0_i32 = arith.constant 0 : i32
    %c0_i32_0 = arith.constant 0 : i32
    %c0_i32_1 = arith.constant 0 : i32
    return %c0_i32, %c0_i32_0 : i32, i32
  }
  func.func @transform_11(%arg0: i32) -> (i32, i32) {
    %c0_i32 = arith.constant 0 : i32
    %c0_i32_0 = arith.constant 0 : i32
    %c0_i32_1 = arith.constant 0 : i32
    return %c0_i32, %c0_i32_0 : i32, i32
  }
  func.func @transform_12(%arg0: i32) -> (i32, i32) {
    %c0_i32 = arith.constant 0 : i32
    %c0_i32_0 = arith.constant 0 : i32
    %c0_i32_1 = arith.constant 0 : i32
    return %c0_i32, %c0_i32_0 : i32, i32
  }
  func.func @transform_13(%arg0: i32) -> (i32, i32) {
    %c0_i32 = arith.constant 0 : i32
    %c0_i32_0 = arith.constant 0 : i32
    %c0_i32_1 = arith.constant 0 : i32
    return %c0_i32, %c0_i32_0 : i32, i32
  }
  func.func @transform_14(%arg0: i32) -> (i32, i32, i32) {
    %c0_i32 = arith.constant 0 : i32
    %c0_i32_0 = arith.constant 0 : i32
    %c0_i32_1 = arith.constant 0 : i32
    return %arg0, %c0_i32, %c0_i32_0 : i32, i32, i32
  }
  func.func @transform_15(%arg0: i32) -> (i32, i32, i32) {
    %c0_i32 = arith.constant 0 : i32
    %c0_i32_0 = arith.constant 0 : i32
    %c0_i32_1 = arith.constant 0 : i32
    return %arg0, %c0_i32, %c0_i32_0 : i32, i32, i32
  }
}

</mosaic_0001>

<bundles_post_ra>
// kernel: tpu_custom_call.1
= control target key start
LH: loop header
LB: loop body
LE: loop exit
PB: predicated region body
PF: predicated region fallthrough
CT: control target
= control target key end

     0   :  { %s2909_s0 = inlined_call_operand.vmem [shape: f32[2,8,32], index: 0, kind: input, shape index: {}]   ;;  %s2910_s1 = inlined_call_operand.vmem [shape: bf16[32,32], index: 1, kind: input, shape index: {}]   ;;  %s2911_s2 = inlined_call_operand.vmem [shape: bf16[32,32], index: 2, kind: input, shape index: {}]   ;;  %s2912_s3 = inlined_call_operand.vmem [shape: bf16[32,32], index: 3, kind: input, shape index: {}]   ;;  %s2913_s4 = inlined_call_operand.vmem [shape: bf16[32,32], index: 4, kind: input, shape index: {}]   ;;  %s2914_s5 = inlined_call_operand.vmem [shape: f32[1,32], index: 5, kind: input, shape index: {}]   ;;  %s2915_s6 = inlined_call_operand.vmem [shape: f32[1,32], index: 6, kind: input, shape index: {}]   ;;  %s2916_s7 = inlined_call_operand.hbm [shape: f32[1,32], index: 7, kind: input, shape index: {}]   ;;  %s2917_s8 = inlined_call_operand.hbm [shape: f32[1,32], index: 8, kind: input, shape index: {}]   ;;  %s2918_s9 = inlined_call_operand.hbm [shape: f32[1,32], index: 9, kind: input, shape index: {}]   ;;  %s2919_s10 = inlined_call_operand.vmem [shape: bf16[32,128], index: 10, kind: input, shape index: {}]   ;;  %s2920_s11 = inlined_call_operand.hbm [shape: bf16[32,128], index: 11, kind: input, shape index: {}]   ;;  %s2921_s12 = inlined_call_operand.vmem [shape: bf16[128,32], index: 12, kind: input, shape index: {}]   ;;  %s2922_s13 = inlined_call_operand.vmem [shape: f32[1,32], index: 13, kind: input, shape index: {}]   ;;  %s2923_s14 = inlined_call_operand.hbm [shape: f32[2,8,32], index: 14, kind: output, shape index: {0}]   ;;  %s2924_s15 = inlined_call_operand.hbm [shape: f32[2,8,8], index: 15, kind: output, shape index: {1}]  }
   0x1   :  { %2939 = sst [smem:[#allocation25_spill]] %s2923_s14 }
   0x2   :  { %2940 = sst [smem:[#allocation26_spill]] %s2924_s15 }
   0x3   :  { %21 = vsyncpa [#allocation3], 0 }
   0x4   :  { %22 = vsyncpa [#allocation6], 0 }
   0x5   :  { %23 = vsyncpa [#allocation9], 0 }
   0x6   :  { %24 = vsyncpa [#allocation4], 0 }
   0x7   :  { %26 = vsyncpa [#allocation4 + $0x1], 0 }
   0x8   :  { %27 = vsyncpa [#allocation12], 0 }
   0x9   :  { %29 = vsyncpa [#allocation12 + $0x1], 0  ;;  %s2457_s18 = smov 0   ;;  %s2459_s19 = smov 0  }
   0xa   :  { %s2461_s20 = smov 0   ;;  %s2463_s21 = smov 0  }
   0xb LB: > { %2941 = sst [smem:[#allocation18_spill]] %s2347_s18  ;;  %s2478_s22 = sadd.s32 4294967295, %s2359_s21   ;;  %s2359_s21 = sphi %s2463_s21, %s2971_s21   ;;  %s2355_s20 = sphi %s2461_s20, %s2973_s20   ;;  %s2351_s19 = sphi %s2459_s19, %s2975_s19   ;;  %s2347_s18 = sphi %s2457_s18, %s2974_s18  }
   0xc   : > { %2942 = sst [smem:[#allocation19_spill]] %s2355_s20  ;;  %s1777_s23 = sadd.s32 4294967294, %s2359_s21  }
   0xd   : > { %2943 = sst [smem:[#allocation20_spill]] %s2359_s21  ;;  %s2482_s24 = sadd.s32 1, %s2359_s21  }
   0xe   : > { %2944 = sst [smem:[#allocation21_spill]] %s2482_s24  ;;  %s341_s25 = sadd.s32 1, %s2355_s20 }
   0xf   : > { %s338_s26 = ssub.s32 %s2359_s21, %s2482_s24  ;;  %p351_p0 = scmp.ne.s32.totalorder %s2355_s20, %s2351_s19 }
  0x10   : > { %p339_p1 = scmp.eq.s32.totalorder %s338_s26, 0  ;;  %p352_p2 = scmp.eq.s32.totalorder %s2478_s22, 1 }
  0x11   : > { %p357_p3 = scmp.ne.s32.totalorder %s2351_s19, %s2347_s18  ;;  %p358_p4 = scmp.eq.s32.totalorder %s1777_s23, 1 }
  0x12   : > { %s2493_s27 = scalar_select %p339_p1, %s2355_s20, %s341_s25  }
  0x13   : > { %p2495_p5 = por %p352_p2, %p351_p0  ;;  %p2499_p6 = por %p358_p4, %p357_p3 }
  0x14   : > { %2945 = sst [smem:[#allocation22_spill]] %s2493_s27  ;;  %p1778_p7 = scmp.ge.s32.totalorder %s2359_s21, 1 }
  0x15   : > { %s2946_s28 = scalar_select %p2495_p5, 1, 0 }
  0x16   : > { %s2948_s29 = scalar_select %p2499_p6, 1, 0 }
  0x17   : > { %2947 = sst [smem:[#allocation23_spill]] %s2946_s28  ;;  %p391_p8 = scmp.lt.s32.totalorder %s2359_s21, 3 }
  0x18   : > { %2949 = sst [smem:[#allocation24_spill]] %s2948_s29  ;;  %p2932_p9 = scmp.eq.s32.totalorder %s2478_s22, 0 }
  0x19   : > { %p2506_p10 = pnand %p1778_p7, %p391_p8  ;;  %s2361_s16 = smov [#allocation5]  }
  0x1a   : > { %s433_s17 = sshll.u32 %s2361_s16, 4  ;;  %s2362_s23 = smov [#allocation2]   ;;  %s434_s17 = int_to_ptr.vmem [resolvable:$true] %s433_s17 }
  0x1b   : > { %s2950_s30 = scalar_select %p2506_p10, 1, 0 }
  0x1c   : > { %p2018_p11 = pneg %p2506_p10  ;;  %s422_s25 = sshll.u32 %s2362_s23, 4  ;;  %s2518_s25 = int_to_ptr.vmem [resolvable:$true] %s422_s25 }
  0x1d   : > { %s2363_s27 = smov [#allocation7]   ;;  %s2141_s16 = scalar_lea.hbm %s2917_s8, 16 }
  0x1e   : > { %p2514_p12 = pnand %p2932_p9, %p2018_p11  ;;  %s444_s20 = sshll.u32 %s2363_s27, 4  ;;  %s2520_s20 = int_to_ptr.vmem [resolvable:$true] %s444_s20 }
  0x1f   : > { %p2142_p13 = scmp.ne.s32.totalorder %s2917_s8, %s2141_s16  ;;  %p2148_p3 = scmp.lt.u32.totalorder %s2141_s16, %s2917_s8 }
  0x20   : > { %p2530_p0 = pneg %p2514_p12 }
  0x22   : > { %p2144_p1 = pnand %p2530_p0, %p2142_p13 }
  0x24   : > { %p2145_p2 = pneg %p2144_p1 }
  0x26   : > { %p2150_p4 = pnand %p2148_p3, %p2145_p2 }
  0x28   : > { %2153 = shalt.err (!%p2150_p4)
}
  0x29   : > { %s2154_s24 = scalar_lea.vmem %s434_s17, 16  ;;  %s2161_s18 = scalar_lea.vmem %s434_s17, 32 }
  0x2a   : > { %p2155_p7 = scmp.ne.s32.totalorder %s434_s17, %s2154_s24  ;;  %p2162_p9 = scmp.lt.s32.totalorder %s434_s17, %s434_s17 }
  0x2b   : > { %p2163_p6 = scmp.lt.s32.totalorder %s2161_s18, %s2154_s24 }
  0x2c   : > { %p2157_p8 = pnand %p2155_p7, %p2530_p0 }
  0x2d   : > { %p2164_p5 = por %p2163_p6, %p2162_p9 }
  0x2e   : > { %p2158_p11 = pneg %p2157_p8 }
  0x30   : > { %p2165_p10 = pnand %p2164_p5, %p2158_p11 }
  0x32   : > { %2168 = shalt.err (!%p2165_p10)
}
  0x33   : > { %2024 = dma.hbm_to_vmem [thread:$0]  (!%p2514_p12), %s2917_s8, 16, %s434_s17, [#allocation6]  }
  0x34   : > { %s2169_s27 = scalar_lea.hbm %s2916_s7, 16 }
  0x35   : > { %p2170_p13 = scmp.ne.s32.totalorder %s2916_s7, %s2169_s27  ;;  %p2176_p5 = scmp.lt.u32.totalorder %s2169_s27, %s2916_s7 }
  0x37   : > { %p2172_p1 = pnand %p2170_p13, %p2530_p0 }
  0x39   : > { %p2173_p6 = pneg %p2172_p1 }
  0x3b   : > { %p2178_p9 = pnand %p2176_p5, %p2173_p6 }
  0x3d   : > { %2181 = shalt.err (!%p2178_p9)
}
  0x3e   : > { %s2182_s17 = scalar_lea.vmem %s2518_s25, 16  ;;  %s2189_s15 = scalar_lea.vmem %s2518_s25, 32 }
  0x3f   : > { %p2183_p10 = scmp.ne.s32.totalorder %s2518_s25, %s2182_s17  ;;  %p2190_p4 = scmp.lt.s32.totalorder %s2518_s25, %s2518_s25 }
  0x40   : > { %p2191_p7 = scmp.lt.s32.totalorder %s2189_s15, %s2182_s17 }
  0x41   : > { %p2185_p2 = pnand %p2183_p10, %p2530_p0 }
  0x42   : > { %p2192_p8 = por %p2191_p7, %p2190_p4 }
  0x43   : > { %p2186_p3 = pneg %p2185_p2 }
  0x45   : > { %p2193_p11 = pnand %p2192_p8, %p2186_p3 }
  0x47   : > { %2196 = shalt.err (!%p2193_p11)
}
  0x48   : > { %2021 = dma.hbm_to_vmem [thread:$0]  (!%p2514_p12), %s2916_s7, 16, %s2518_s25, [#allocation3]  }
  0x49   : > { %s2197_s16 = scalar_lea.hbm %s2918_s9, 16 }
  0x4a   : > { %p2198_p13 = scmp.ne.s32.totalorder %s2918_s9, %s2197_s16  ;;  %p2204_p5 = scmp.lt.u32.totalorder %s2197_s16, %s2918_s9 }
  0x4c   : > { %p2200_p1 = pnand %p2198_p13, %p2530_p0 }
  0x4e   : > { %p2201_p6 = pneg %p2200_p1 }
  0x50   : > { %p2206_p9 = pnand %p2204_p5, %p2201_p6 }
  0x52   : > { %2209 = shalt.err (!%p2206_p9)
}
  0x53   : > { %s2210_s25 = scalar_lea.vmem %s2520_s20, 16  ;;  %s2217_s15 = scalar_lea.vmem %s2520_s20, 32 }
  0x54   : > { %p2211_p10 = scmp.ne.s32.totalorder %s2520_s20, %s2210_s25  ;;  %p2218_p4 = scmp.lt.s32.totalorder %s2520_s20, %s2520_s20 }
  0x55   : > { %p2219_p7 = scmp.lt.s32.totalorder %s2217_s15, %s2210_s25 }
  0x56   : > { %p2213_p2 = pnand %p2211_p10, %p2530_p0 }
  0x57   : > { %p2220_p8 = por %p2219_p7, %p2218_p4 }
  0x58   : > { %p2214_p3 = pneg %p2213_p2 }
  0x5a   : > { %p2221_p11 = pnand %p2220_p8, %p2214_p3 }
  0x5c   : > { %2224 = shalt.err (!%p2221_p11)
}
  0x5d   : > { %2027 = dma.hbm_to_vmem [thread:$0]  (!%p2514_p12), %s2918_s9, 16, %s2520_s20, [#allocation6]  }
  0x5e   : > { %s2364_s29 = smov [#allocation8]   ;;  %s2225_s24 = scalar_lea.hbm %s2920_s11, 256 }
  0x5f   : > { %s457_s14 = sshll.u32 %s2364_s29, 4  ;;  %p2226_p13 = scmp.ne.s32.totalorder %s2920_s11, %s2225_s24  ;;  %s458_s14 = int_to_ptr.vmem [resolvable:$true] %s457_s14 }
  0x60   : > { %p2232_p5 = scmp.lt.u32.totalorder %s2225_s24, %s2920_s11 }
  0x61   : > { %p2228_p1 = pnand %p2226_p13, %p2530_p0 }
  0x63   : > { %p2229_p6 = pneg %p2228_p1 }
  0x65   : > { %p2234_p9 = pnand %p2232_p5, %p2229_p6 }
  0x67   : > { %2237 = shalt.err (!%p2234_p9)
}
  0x68   : > { %s2238_s20 = scalar_lea.vmem %s458_s14, 256  ;;  %p2246_p4 = scmp.lt.s32.totalorder %s458_s14, %s458_s14 }
  0x69   : > { %p2239_p10 = scmp.ne.s32.totalorder %s458_s14, %s2238_s20  ;;  %p2247_p7 = scmp.lt.s32.totalorder %s2238_s20, %s2238_s20 }
  0x6b   : > { %p2241_p2 = pnand %p2239_p10, %p2530_p0  ;;  %p2248_p8 = por %p2247_p7, %p2246_p4 }
  0x6d   : > { %p2242_p3 = pneg %p2241_p2 }
  0x6f   : > { %p2249_p11 = pnand %p2248_p8, %p2242_p3 }
  0x71   : > { %2252 = shalt.err (!%p2249_p11)
}
  0x72   : > { %s2365_s28 = smov 64   ;;  %s2366_s21 = smov 4  }
  0x73   : > { %2030 = dma.hbm_to_vmem [thread:$0]  (!%p2514_p12), %s2920_s11, 256, %s458_s14, [#allocation9], %s2365_s28, %s2365_s28, %s2366_s21  }
  0x74   : > { %p2953_p13 = scmp.ne.s32.totalorder %s2950_s30, 0 }
  0x75   : > { %p2954_p1 = scmp.eq.s32.totalorder (!%p2953_p13), %s2478_s22, 0 }
  0x76   : > { %486 = sbr.rel (%p2953_p13) target bundleno = 2696 (0xa88), region = 76 }
  0x7d   : > { %2326 = dma.done.wait (%p2954_p1), [#allocation3], 16   ;;  %p2955_p0 = pmov %p2954_p1 }
  0x7f   : > { %2328 = vsyncadd (%p2955_p0), [#allocation3], 4294967280  ;;  %p2956_p6 = pmov %p2955_p0 }
  0x80   : > { %p2957_p5 = pmov %p2955_p0 }
  0x81   : > { %2330 = dma.done.wait (%p2956_p6), [#allocation6], 32  }
  0x82   : > { %2332 = vsyncadd (%p2957_p5), [#allocation6], 4294967264  ;;  %p2958_p9 = pmov %p2955_p0 }
  0x83   : > { %p2959_p12 = pmov %p2955_p0 }
  0x84   : > { %2334 = dma.done.wait (%p2958_p9), [#allocation9], 256  }
  0x85   : > { %2336 = vsyncadd (%p2959_p12), [#allocation9], 4294967040  ;;  %p550_p10 = scmp.lt.s32.totalorder %s2478_s22, 1  ;;  %vm558_vm0 = vcmask 261120   ;;  %v2093_v3 = vld [vmem:[%s2910_s1] sm:$0xff]   ;;  %v2367_v4 = vmov 0.0  }
  0x86   : > { %1882 = vmatprep.subr.bf16.mxu1 %v2367_v4  ;;  %vm2368_vm1 = vmmov 0   ;;  %v2094_v5 = vld [vmem:[%s2910_s1 + $0x8] sm:$0xff]   ;;  %1912 = vmatprep.subr.bf16.mxu0 %v2367_v4  ;;  %v1792_v10 = vld [vmem:[#allocation7] ss:$0 sm:$0xff]  ;;  %vm885_vm2 = vcmask 1043456   ;;  %s2369_s18 = smov 120  }
  0x87   : > { %s551_s30 = scalar_select %p550_p10, %s2478_s22, 1  ;;  %1886 = vmatprep.mubr.msk.bf16.mxu1 %vm2368_vm1, %v2367_v4  ;;  %1883 = vmatpush3.bf16.msra.mxu1 %v2093_v3  ;;  %v2095_v13 = vld [vmem:[%s2911_s2] sm:$0xff]   ;;  %v2096_v15 = vld [vmem:[%s2911_s2 + $0x8] sm:$0xff]   ;;  %vm812_vm3 = vcmask 64512   ;;  %vm869_vm7 = vcmask 1040384   ;;  %vm879_vm8 = vcmask 1041408  }
  0x88   : > { %1884 = vmatprep.subr.bf16.mxu1 %v2367_v4  ;;  %1914 = vmatprep.mubr.msk.bf16.mxu0 %vm2368_vm1, %v2367_v4  ;;  %v2097_v16 = vld [vmem:[%s2912_s3] sm:$0xff]   ;;  %v2098_v17 = vld [vmem:[%s2912_s3 + $0x8] sm:$0xff]   ;;  %s2370_s17 = smov 104   ;;  %s2371_s25 = smov 112   ;;  %vm1303_vm9 = vcmask 130048   ;;  %vm1305_vm10 = vcmask 195584  }
  0x89   : > { %s1791_s26 = sshll.u32 %s551_s30, 3  ;;  %v1796_v51 = vld [vmem:[%s2914_s5] ss:$0 sm:$0xff]  ;;  %v1802_v60 = vld [vmem:[#allocation5] ss:$0 sm:$0xff]  ;;  %s2719_s15 = sand.u32 1, %s2351_s19  }
  0x8a   : > { %s553_s27 = scalar_lea.vmem %s2909_s0, %s1791_s26  ;;  %v1797_v53 = vld [vmem:[%s2915_s6] ss:$0 sm:$0xff]  ;;  %s2938_s20 = sshll.u32 %s2719_s15, 3 }
  0x8b   : > { %v2631_v0 = vld [vmem:[%s553_s27] sm:$0xff]  ;;  %1885 = vmatpush3.bf16.msra.mxu1 %v2094_v5  ;;  %s2725_s28 = scalar_lea.vmem [#allocation11], %s2938_s20  ;;  %s2372_s16 = smov 8  }
  0x8c   : > { %v557_v1 = vmul.f32 %v2631_v0, %v2631_v0  ;;  %1890 = vmatprep.subr.bf16.mxu1 %v2367_v4  ;;  %v1801_v58 = vld [vmem:[#allocation2] ss:$0 sm:$0xff]  ;;  %s2373_s23 = smov 16   ;;  %s2374_s14 = smov 24  }
  0x8d   : > { %s1645_s21 = sshll.u32 %s2725_s28, 4  ;;  %s1619_s29 = scalar_lea.sflag [#allocation12], %s2719_s15  ;;  %s1646_s21 = int_to_ptr.vmem [resolvable:$true] %s1645_s21 }
  0x8e   : > { %v559_v2 = vsel %vm558_vm0, %v557_v1, 0.0  ;;  %s2375_s30 = smov [#allocation11]  }
  0x8f   : > { %560 = vadd.xlane.f32.xlu0 %v559_v2  ;;  %s2257_s26 = sshll.u32 %s2375_s30, 4  ;;  %s2258_s26 = int_to_ptr.vmem [resolvable:$false] %s2257_s26 }
  0x90   : > { %s2259_s20 = scalar_lea.vmem %s2258_s26, 256  ;;  %p2260_p8 = scmp.lt.s32.totalorder %s1646_s21, %s2258_s26 }
 0x11c   : > { %v561_v6 = vpop.xlane.xlu0 %560 }
 0x11d   : > { %v563_v7 = vmul.f32 0.03125, %v561_v6 }
 0x11f   : > { %v564_v8 = vadd.f32 1.1920929e-07, %v563_v7 }
 0x121   : > { %2113 = vrsqrt.f32 %v564_v8 }
 0x12b   : > { %v2114_v9 = vpop.eup %2113 }
 0x12c   : > { %v566_v11 = vmul.f32 %v2114_v9, %v2631_v0 }
 0x12e   : > { %v573_v12 = vmul.f32 %v1792_v10, %v566_v11 }
 0x130   : > { %v574_v14 = vpack.c.bf16 %v573_v12, %v573_v12  ;;  %v807_v12 = vlaneseq }
 0x132   : > { %1887 = vmatmul.mubr.msk.bf16.vlgmr.msra.gmra.mrb[0].mxu1 %vm558_vm0, %v574_v14 }
 0x133   : > { %1891 = vmatpush3.bf16.msra.mxu1 %v2095_v13  ;;  %1894 = vmatprep.mubr.msk.bf16.mxu1 %vm2368_vm1, %v2367_v4  ;;  %v808_v13 = vshrl.u32 %v807_v12, 7 }
 0x134   : > { %1892 = vmatprep.subr.bf16.mxu1 %v2367_v4 }
 0x137   : > { %1893 = vmatpush3.bf16.msra.mxu1 %v2096_v15 }
 0x138   : > { %1898 = vmatprep.subr.bf16.mxu1 %v2367_v4 }
 0x13a   : > { %1895 = vmatmul.mubr.msk.bf16.vlgmr.msra.gmra.mrb[4].mxu1 %vm558_vm0, %v574_v14 }
 0x13b   : > { %1899 = vmatpush3.bf16.msra.mxu1 %v2097_v16  ;;  %1902 = vmatprep.mubr.msk.bf16.mxu1 %vm2368_vm1, %v2367_v4 }
 0x13c   : > { %1900 = vmatprep.subr.bf16.mxu1 %v2367_v4 }
 0x13f   : > { %1901 = vmatpush3.bf16.msra.mxu1 %v2098_v17 }
 0x140   : > { %1906 = vmatprep.subr.bf16.mxu1 %v2367_v4 }
 0x142   : > { %1903 = vmatmul.mubr.msk.bf16.vlgmr.msra.gmra.mrb[8].mxu1 %vm558_vm0, %v574_v14  ;;  %v810_v14 = vand.u32 127, %v807_v12 }
 0x143   : > { %1908 = vmatprep.mubr.msk.bf16.mxu1 %vm2368_vm1, %v2367_v4 }
 0x144   : > { %vm811_vm4 = vcmp.ge.s32.totalorder %v808_v13, %v810_v14  ;;  %vm862_vm5 = vcmp.eq.s32.totalorder %v810_v14, 0  ;;  %vm864_vm6 = vcmp.eq.s32.totalorder %v808_v13, %v810_v14 }
 0x205   : > { %v628_v18 = vpop.f32.mrb[0].mxu1 }
 0x206   : > { %v1888_v19 = vpop.f32.mrb[1].mxu1  ;;  %v636_v20 = vsel %vm558_vm0, %v628_v18, 0.0 }
 0x207   : > { %637 = vadd.xlane.f32.xlu1 %v636_v20  ;;  %v631_v21 = vpop.f32.mrb[2].mxu1 }
 0x208   : > { %v1889_v22 = vpop.f32.mrb[3].mxu1 }
 0x20d   : > { %v714_v23 = vpop.f32.mrb[4].mxu1 }
 0x20e   : > { %v1896_v24 = vpop.f32.mrb[5].mxu1  ;;  %v722_v25 = vsel %vm558_vm0, %v714_v23, 0.0 }
 0x20f   : > { %723 = vadd.xlane.f32.xlu0 %v722_v25  ;;  %v717_v26 = vpop.f32.mrb[6].mxu1 }
 0x210   : > { %v1897_v27 = vpop.f32.mrb[7].mxu1 }
 0x215   : > { %v800_v28 = vpop.f32.mrb[8].mxu1 }
 0x216   : > { %v2678_v29 = vpack.c.bf16 %v800_v28, %v800_v28  ;;  %v1904_v30 = vpop.f32.mrb[9].mxu1 }
 0x217   : > { %v803_v31 = vpop.f32.mrb[10].mxu1 }
 0x218   : > { %v1905_v32 = vpop.f32.mrb[11].mxu1  ;;  %v906_v33 = vsel %vm885_vm2, %v2678_v29, 0 }
 0x219   : > { %1913 = vmatpush3.bf16.msra.mxu0 %v906_v33 }
 0x21a   : > { %1924 = vmatprep.subr.bf16.mxu0 %v2367_v4 }
 0x294   : > { %v638_v34 = vpop.xlane.xlu1 %637 }
 0x295   : > { %v639_v35 = vmul.f32 0.03125, %v638_v34 }
 0x297   : > { %v640_v36 = vsub.f32 %v628_v18, %v639_v35 }
 0x299   : > { %v641_v37 = vmul.f32 %v640_v36, %v640_v36 }
 0x29b   : > { %v642_v38 = vsel %vm558_vm0, %v641_v37, 0.0 }
 0x29c   : > { %643 = vadd.xlane.f32.xlu0 %v642_v38  ;;  %v724_v39 = vpop.xlane.xlu0 %723 }
 0x29d   : > { %v725_v40 = vmul.f32 0.03125, %v724_v39 }
 0x29f   : > { %v726_v41 = vsub.f32 %v714_v23, %v725_v40 }
 0x2a1   : > { %v727_v42 = vmul.f32 %v726_v41, %v726_v41 }
 0x2a3   : > { %v728_v43 = vsel %vm558_vm0, %v727_v42, 0.0 }
 0x2a4   : > { %729 = vadd.xlane.f32.xlu1 %v728_v43 }
 0x329   : > { %v644_v44 = vpop.xlane.xlu0 %643 }
 0x32a   : > { %v645_v45 = vmul.f32 0.03125, %v644_v44 }
 0x32c   : > { %v646_v46 = vadd.f32 1e-05, %v645_v45 }
 0x32e   : > { %2115 = vrsqrt.f32 %v646_v46 }
 0x331   : > { %v730_v47 = vpop.xlane.xlu1 %729 }
 0x332   : > { %v731_v48 = vmul.f32 0.03125, %v730_v47 }
 0x334   : > { %v732_v49 = vadd.f32 1e-05, %v731_v48 }
 0x336   : > { %2117 = vrsqrt.f32 %v732_v49 }
 0x338   : > { %v2116_v50 = vpop.eup %2115 }
 0x339   : > { %v648_v52 = vmul.f32 %v2116_v50, %v640_v36 }
 0x33b   : > { %v655_v54 = vmul.f32 %v1796_v51, %v648_v52 }
 0x33d   : > { %v662_v55 = vadd.f32 %v1797_v53, %v655_v54 }
 0x33f   : > { %v663_v56 = vpack.c.bf16 %v662_v55, %v662_v55 }
 0x340   : > { %v2118_v57 = vpop.eup %2117 }
 0x341   : > { %949 = vrot.lane.b32.xlu0 %v663_v56, %s2369_s18  ;;  %v734_v59 = vmul.f32 %v2118_v57, %v726_v41 }
 0x343   : > { %v741_v61 = vmul.f32 %v1801_v58, %v734_v59 }
 0x345   : > { %1177 = vrot.lane.b32.xlu0 %v663_v56, %s2370_s17  ;;  %v748_v62 = vadd.f32 %v1802_v60, %v741_v61 }
 0x347   : > { %v749_v63 = vpack.c.bf16 %v748_v62, %v748_v62 }
 0x349   : > { %952 = vrot.lane.b32.xlu1 %v749_v63, %s2369_s18  ;;  %v817_v1 = vsel %vm812_vm3, %v749_v63, 0 }
 0x34a   : > { %1907 = vmatpush3.bf16.xpose.msra.mxu1 %v817_v1 }
 0x34b   : > { %1918 = vmatprep.subr.bf16.mxu1 %v2367_v4 }
 0x34d   : > { %1066 = vrot.lane.b32.xlu1 %v749_v63, %s2371_s25 }
 0x351   : > { %1064 = vrot.lane.b32.xlu1 %v663_v56, %s2371_s25  ;;  %1909 = vmatmul.mubr.msk.bf16.vlgmr.msra.gmra.mrb[12].mxu1 %vm812_vm3, %v663_v56 }
 0x352   : > { %1920 = vmatprep.mubr.msk.bf16.mxu1 %vm2368_vm1, %v2367_v4 }
 0x355   : > { %1179 = vrot.lane.b32.xlu1 %v749_v63, %s2370_s17 }
 0x3b3   : > { %v950_v6 = vpop.permute.xlu0 %949 }
 0x3b7   : > { %v1178_v11 = vpop.permute.xlu0 %1177 }
 0x3bb   : > { %v953_v2 = vpop.permute.xlu1 %952 }
 0x3bc   : > { %v958_v3 = vsel %vm812_vm3, %v953_v2, 0 }
 0x3bd   : > { %1919 = vmatpush3.bf16.xpose.msra.mxu1 %v958_v3 }
 0x3be   : > { %1930 = vmatprep.subr.bf16.mxu1 %v2367_v4 }
 0x3bf   : > { %v1067_v5 = vpop.permute.xlu1 %1066 }
 0x3c0   : > { %v1072_v8 = vsel %vm812_vm3, %v1067_v5, 0 }
 0x3c3   : > { %v1065_v7 = vpop.permute.xlu1 %1064 }
 0x3c4   : > { %1921 = vmatmul.mubr.msk.bf16.vlgmr.msra.gmra.mrb[16].mxu1 %vm812_vm3, %v950_v6 }
 0x3c5   : > { %1931 = vmatpush3.bf16.xpose.msra.mxu1 %v1072_v8  ;;  %1932 = vmatprep.mubr.msk.bf16.mxu1 %vm2368_vm1, %v2367_v4 }
 0x3c6   : > { %1942 = vmatprep.subr.bf16.mxu1 %v2367_v4 }
 0x3c7   : > { %v1180_v9 = vpop.permute.xlu1 %1179 }
 0x3c8   : > { %v1185_v10 = vsel %vm812_vm3, %v1180_v9, 0 }
 0x3cc   : > { %1933 = vmatmul.mubr.msk.bf16.vlgmr.msra.gmra.mrb[20].mxu1 %vm812_vm3, %v1065_v7 }
 0x3cd   : > { %1943 = vmatpush3.bf16.xpose.msra.mxu1 %v1185_v10  ;;  %1944 = vmatprep.mubr.msk.bf16.mxu1 %vm2368_vm1, %v2367_v4 }
 0x3ce   : > { %1954 = vmatprep.subr.bf16.mxu1 %v2367_v4 }
 0x3d4   : > { %1945 = vmatmul.mubr.msk.bf16.vlgmr.msra.gmra.mrb[24].mxu1 %vm812_vm3, %v1178_v11 }
 0x3d5   : > { %1958 = vmatprep.mubr.msk.bf16.mxu1 %vm2368_vm1, %v2367_v4 }
 0x424   : > { %v853_v15 = vpop.f32.mrb[12].mxu1 }
 0x425   : > { %v859_v16 = vmul.f32 0.35355338, %v853_v15  ;;  %v1910_v17 = vpop.f32.mrb[13].mxu1 }
 0x426   : > { %v856_v18 = vpop.f32.mrb[14].mxu1 }
 0x427   : > { %v860_v19 = vsel %vm811_vm4, %v859_v16, -1e+30  ;;  %v1911_v20 = vpop.f32.mrb[15].mxu1 }
 0x428   : > { %v861_v21 = vmax.f32 %v860_v19, 0.0 }
 0x42a   : > { %v863_v22 = vsel %vm862_vm5, 0.0, %v861_v21 }
 0x42b   : > { %v865_v23 = vsel %vm864_vm6, 0.0, %v863_v22 }
 0x42c   : > { %v867_v24 = vrot.slane %v865_v23, 7 }
 0x42e   : > { %v870_v25 = vsel %vm869_vm7, 0.0, %v867_v24 }
 0x42f   : > { %v872_v26 = vrot.slane %v870_v25, 7 }
 0x431   : > { %v874_v27 = vsel %vm869_vm7, 0.0, %v872_v26 }
 0x432   : > { %v875_v28 = vadd.f32 %v874_v27, %v870_v25 }
 0x434   : > { %v877_v30 = vrot.slane %v875_v28, 6 }
 0x436   : > { %v880_v31 = vsel %vm879_vm8, 0.0, %v877_v30 }
 0x437   : > { %v881_v32 = vadd.f32 %v880_v31, %v875_v28 }
 0x439   : > { %v883_v33 = vrot.slane %v881_v32, 4 }
 0x43b   : > { %v886_v34 = vsel %vm885_vm2, 0.0, %v883_v33 }
 0x43c   : > { %v887_v35 = vadd.f32 %v886_v34, %v881_v32 }
 0x43e   : > { %v889_v36 = vsub.f32 %v860_v19, %v887_v35  ;;  %888 = vst.msk [vmem:[%s2725_s28] sm:$0xff] %vm812_vm3, %v887_v35 }
 0x440   : > { %v890_v37 = vsel %vm812_vm3, %v889_v36, -inf }
 0x441   : > { %891 = vmax.xlane.f32.xlu1 %v890_v37 }
 0x497   : > { %v994_v38 = vpop.f32.mrb[16].mxu1 }
 0x498   : > { %v1000_v39 = vmul.f32 0.35355338, %v994_v38  ;;  %v1922_v40 = vpop.f32.mrb[17].mxu1 }
 0x499   : > { %v997_v41 = vpop.f32.mrb[18].mxu1 }
 0x49a   : > { %v1001_v42 = vsel %vm811_vm4, %v1000_v39, -1e+30  ;;  %v1923_v43 = vpop.f32.mrb[19].mxu1 }
 0x49b   : > { %v1002_v44 = vsub.f32 %v1001_v42, %v887_v35 }
 0x49d   : > { %v1003_v45 = vsel %vm812_vm3, %v1002_v44, -inf }
 0x49e   : > { %1004 = vmax.xlane.f32.xlu0 %v1003_v45 }
 0x49f   : > { %v1108_v46 = vpop.f32.mrb[20].mxu1 }
 0x4a0   : > { %v1114_v47 = vmul.f32 0.35355338, %v1108_v46  ;;  %v1934_v48 = vpop.f32.mrb[21].mxu1  ;;  %v2099_v46 = vld [vmem:[%s2913_s4] sm:$0xff]  }
 0x4a1   : > { %v1111_v49 = vpop.f32.mrb[22].mxu1  ;;  %1955 = vmatpush3.bf16.msra.mxu1 %v2099_v46 }
 0x4a2   : > { %v1115_v50 = vsel %vm811_vm4, %v1114_v47, -1e+30  ;;  %v1935_v51 = vpop.f32.mrb[23].mxu1  ;;  %1956 = vmatprep.subr.bf16.mxu1 %v2367_v4 }
 0x4a3   : > { %v1116_v52 = vsub.f32 %v1115_v50, %v887_v35  ;;  %v2100_v51 = vld [vmem:[%s2913_s4 + $0x8] sm:$0xff]  }
 0x4a5   : > { %v1117_v53 = vsel %vm812_vm3, %v1116_v52, -inf  ;;  %1957 = vmatpush3.bf16.msra.mxu1 %v2100_v51 }
 0x4a6   : > { %1118 = vmax.xlane.f32.xlu0 %v1117_v53  ;;  %1970 = vmatprep.subr.bf16.mxu1 %v2367_v4 }
 0x4a7   : > { %v1221_v54 = vpop.f32.mrb[24].mxu1 }
 0x4a8   : > { %v1227_v55 = vmul.f32 0.35355338, %v1221_v54  ;;  %v1946_v56 = vpop.f32.mrb[25].mxu1 }
 0x4a9   : > { %v1224_v57 = vpop.f32.mrb[26].mxu1 }
 0x4aa   : > { %v1228_v58 = vsel %vm811_vm4, %v1227_v55, -1e+30  ;;  %v1947_v59 = vpop.f32.mrb[27].mxu1 }
 0x4ab   : > { %v1229_v60 = vsub.f32 %v1228_v58, %v887_v35 }
 0x4ad   : > { %v1230_v61 = vsel %vm812_vm3, %v1229_v60, -inf }
 0x4ae   : > { %1231 = vmax.xlane.f32.xlu0 %v1230_v61 }
 0x4ce   : > { %v892_v62 = vpop.xlane.xlu1 %891 }
 0x4cf   : > { %v893_v63 = vsub.f32 %v889_v36, %v892_v62 }
 0x4d1   : > { %v894_v1 = vmul.f32 1.442695, %v893_v63 }
 0x4d3   : > { %2119 = vpow2.f32 %v894_v1 }
 0x4dd   : > { %v2120_v2 = vpop.eup %2119 }
 0x4de   : > { %v896_v3 = vsel %vm812_vm3, %v2120_v2, 0.0 }
 0x4df   : > { %897 = vadd.xlane.f32.xlu1 %v896_v3 }
 0x4f0   : > { %1016 = vrot.lane.b32.xlu1 %v2678_v29, %s2369_s18  ;;  %s2961_s18 = sld [smem:[#allocation26_spill]] }
 0x52b   : > { %v1005_v5 = vpop.xlane.xlu0 %1004 }
 0x52c   : > { %v1006_v6 = vsub.f32 %v1002_v44, %v1005_v5 }
 0x52e   : > { %v1007_v7 = vmul.f32 1.442695, %v1006_v6 }
 0x530   : > { %2121 = vpow2.f32 %v1007_v7 }
 0x533   : > { %v1119_v8 = vpop.xlane.xlu0 %1118 }
 0x534   : > { %v1120_v9 = vsub.f32 %v1116_v52, %v1119_v8 }
 0x536   : > { %v1121_v10 = vmul.f32 1.442695, %v1120_v9 }
 0x538   : > { %2123 = vpow2.f32 %v1121_v10 }
 0x53a   : > { %v2122_v11 = vpop.eup %2121 }
 0x53b   : > { %v1232_v12 = vpop.xlane.xlu0 %1231  ;;  %v1009_v13 = vsel %vm812_vm3, %v2122_v11, 0.0 }
 0x53c   : > { %v1233_v14 = vsub.f32 %v1229_v60, %v1232_v12  ;;  %1010 = vadd.xlane.f32.xlu0 %v1009_v13  ;;  %v2101_v12 = vld [vmem:[%s2919_s10] sm:$0xff]  }
 0x53d   : > { %v2102_v13 = vld [vmem:[#allocation8] sm:$0xff]  }
 0x53e   : > { %v1234_v15 = vmul.f32 1.442695, %v1233_v14  ;;  %v2104_v14 = vld [vmem:[#allocation8 + $0x8] sm:$0xff]  }
 0x540   : > { %2125 = vpow2.f32 %v1234_v15 }
 0x542   : > { %v2124_v16 = vpop.eup %2123 }
 0x543   : > { %v1123_v17 = vsel %vm812_vm3, %v2124_v16, 0.0 }
 0x544   : > { %1124 = vadd.xlane.f32.xlu1 %v1123_v17 }
 0x54a   : > { %v2126_v18 = vpop.eup %2125 }
 0x54b   : > { %v1236_v19 = vsel %vm812_vm3, %v2126_v18, 0.0 }
 0x54c   : > { %1237 = vadd.xlane.f32.xlu0 %v1236_v19  ;;  %v1817_v19 = vld [vmem:[%s2922_s13] ss:$0 sm:$0xff] }
 0x555   : > { %1242 = vrot.lane.b32.xlu1 %v2678_v29, %s2370_s17  ;;  %s2962_s17 = smov %s2961_s18 }
 0x562   : > { %1129 = vrot.lane.b32.xlu0 %v2678_v29, %s2371_s25 }
 0x56c   : > { %v898_v20 = vpop.xlane.xlu1 %897 }
 0x56d   : > { %2127 = vrcp.f32 %v898_v20 }
 0x570   : > { %v1017_v23 = vpop.permute.xlu1 %1016 }
 0x571   : > { %v1022_v25 = vsel %vm885_vm2, %v1017_v23, 0  ;;  %v2105_v23 = vld [vmem:[%s2921_s12] sm:$0xff]  }
 0x577   : > { %v2128_v21 = vpop.eup %2127 }
 0x578   : > { %v900_v22 = vmul.f32 %v2128_v21, %v2120_v2 }
 0x57a   : > { %v901_v24 = vpack.c.bf16 %v900_v22, %v900_v22 }
 0x57c   : > { %1915 = vmatmul.mubr.msk.bf16.vlgmr.msra.gmra.mrb[0].mxu0 %vm812_vm3, %v901_v24  ;;  %v2106_v24 = vld [vmem:[%s2921_s12 + $0x8] sm:$0xff]  }
 0x57d   : > { %1925 = vmatpush3.bf16.msra.mxu0 %v1022_v25  ;;  %1926 = vmatprep.mubr.msk.bf16.mxu0 %vm2368_vm1, %v2367_v4  ;;  %v2107_v25 = vld [vmem:[%s2921_s12 + $0x10] sm:$0xff]  }
 0x57e   : > { %1936 = vmatprep.subr.bf16.mxu0 %v2367_v4 }
 0x5c9   : > { %v1011_v26 = vpop.xlane.xlu0 %1010 }
 0x5ca   : > { %2129 = vrcp.f32 %v1011_v26  ;;  %v2108_v26 = vld [vmem:[%s2921_s12 + $0x18] sm:$0xff]  }
 0x5d1   : > { %v1125_v27 = vpop.xlane.xlu1 %1124 }
 0x5d2   : > { %2131 = vrcp.f32 %v1125_v27  ;;  %v2109_v27 = vld [vmem:[%s2921_s12 + $0x20] sm:$0xff]  }
 0x5d4   : > { %v2130_v29 = vpop.eup %2129 }
 0x5d5   : > { %v1013_v28 = vmul.f32 %v2130_v29, %v2122_v11  ;;  %v1243_v36 = vpop.permute.xlu1 %1242  ;;  %v2110_v29 = vld [vmem:[%s2921_s12 + $0x28] sm:$0xff]  }
 0x5d6   : > { %v1248_v38 = vsel %vm885_vm2, %v1243_v36, 0 }
 0x5d7   : > { %v1014_v30 = vpack.c.bf16 %v1013_v28, %v1013_v28  ;;  %v2111_v28 = vld [vmem:[%s2921_s12 + $0x30] sm:$0xff]  }
 0x5d9   : > { %1927 = vmatmul.mubr.msk.bf16.vlgmr.msra.gmra.mrb[4].mxu0 %vm812_vm3, %v1014_v30  ;;  %v1238_v31 = vpop.xlane.xlu0 %1237  ;;  %v2112_v30 = vld [vmem:[%s2921_s12 + $0x38] sm:$0xff]  }
 0x5da   : > { %2133 = vrcp.f32 %v1238_v31  ;;  %1938 = vmatprep.mubr.msk.bf16.mxu0 %vm2368_vm1, %v2367_v4 }
 0x5dc   : > { %v2132_v32 = vpop.eup %2131 }
 0x5dd   : > { %v1127_v33 = vmul.f32 %v2132_v32, %v2124_v16  ;;  %v1130_v34 = vpop.permute.xlu0 %1129 }
 0x5de   : > { %v1135_v35 = vsel %vm885_vm2, %v1130_v34, 0 }
 0x5df   : > { %1937 = vmatpush3.bf16.msra.mxu0 %v1135_v35  ;;  %v1128_v37 = vpack.c.bf16 %v1127_v33, %v1127_v33 }
 0x5e0   : > { %1948 = vmatprep.subr.bf16.mxu0 %v2367_v4 }
 0x5e2   : > { %1939 = vmatmul.mubr.msk.bf16.vlgmr.msra.gmra.mrb[8].mxu0 %vm812_vm3, %v1128_v37 }
 0x5e3   : > { %1949 = vmatpush3.bf16.msra.mxu0 %v1248_v38  ;;  %1950 = vmatprep.mubr.msk.bf16.mxu0 %vm2368_vm1, %v2367_v4 }
 0x5e4   : > { %v2134_v39 = vpop.eup %2133  ;;  %1962 = vmatprep.subr.bf16.mxu0 %v2367_v4 }
 0x5e5   : > { %v1240_v40 = vmul.f32 %v2134_v39, %v2126_v18 }
 0x5e7   : > { %v1241_v41 = vpack.c.bf16 %v1240_v40, %v1240_v40 }
 0x5ea   : > { %1951 = vmatmul.mubr.msk.bf16.vlgmr.msra.gmra.mrb[12].mxu0 %vm812_vm3, %v1241_v41 }
 0x5eb   : > { %1966 = vmatprep.mubr.msk.bf16.mxu0 %vm2368_vm1, %v2367_v4  ;;  %1963 = vmatpush3.bf16.msra.mxu0 %v2101_v12 }
 0x5ec   : > { %1964 = vmatprep.subr.bf16.mxu0 %v2367_v4 }
 0x64f   : > { %v942_v42 = vpop.f32.mrb[0].mxu0 }
 0x650   : > { %v1916_v43 = vpop.f32.mrb[1].mxu0 }
 0x651   : > { %v945_v44 = vpop.f32.mrb[2].mxu0 }
 0x652   : > { %v1917_v45 = vpop.f32.mrb[3].mxu0 }
 0x6ac   : > { %v1058_v47 = vpop.f32.mrb[4].mxu0 }
 0x6ad   : > { %1291 = vrot.lane.b32.xlu1 %v1058_v47, %s2372_s16  ;;  %v1928_v48 = vpop.f32.mrb[5].mxu0  ;;  %s2253_s16 = scalar_lea.vmem %s1646_s21, 128 }
 0x6ae   : > { %v1061_v49 = vpop.f32.mrb[6].mxu0  ;;  %p2254_p2 = scmp.ne.s32.totalorder %s1646_s21, %s2253_s16  ;;  %p2261_p11 = scmp.lt.s32.totalorder %s2259_s20, %s2253_s16 }
 0x6af   : > { %v1929_v50 = vpop.f32.mrb[7].mxu0 }
 0x6b0   : > { %p2262_p13 = por %p2261_p11, %p2260_p8 }
 0x6b5   : > { %v1171_v52 = vpop.f32.mrb[8].mxu0 }
 0x6b6   : > { %1295 = vrot.lane.b32.xlu1 %v1171_v52, %s2373_s23  ;;  %v1940_v53 = vpop.f32.mrb[9].mxu0  ;;  %s2960_s23 = sld [smem:[#allocation23_spill]] }
 0x6b7   : > { %v1174_v54 = vpop.f32.mrb[10].mxu0 }
 0x6b8   : > { %v1941_v55 = vpop.f32.mrb[11].mxu0 }
 0x6bc   : > { %p2963_p3 = scmp.ne.s32.totalorder %s2960_s23, 0 }
 0x6bd   : > { %v1284_v56 = vpop.f32.mrb[12].mxu0 }
 0x6be   : > { %1299 = vrot.lane.b32.xlu0 %v1284_v56, %s2374_s14  ;;  %v1952_v57 = vpop.f32.mrb[13].mxu0  ;;  %s1835_s14 = sshll.u32 %s2478_s22, 7  ;;  %p2255_p4 = pnand %p2254_p2, %p2963_p3 }
 0x6bf   : > { %v1287_v58 = vpop.f32.mrb[14].mxu0  ;;  %s2836_s25 = scalar_lea.hbm %s2961_s18, %s1835_s14 }
 0x6c0   : > { %v1953_v59 = vpop.f32.mrb[15].mxu0  ;;  %p2256_p7 = pneg %p2255_p4 }
 0x6c2   : > { %p2263_p1 = pnand %p2262_p13, %p2256_p7 }
 0x71f   : > { %v1292_v60 = vpop.permute.xlu1 %1291 }
 0x720   : > { %v1302_v62 = vsel %vm812_vm3, %v942_v42, %v1292_v60 }
 0x728   : > { %v1296_v61 = vpop.permute.xlu1 %1295 }
 0x729   : > { %v1304_v63 = vsel %vm1303_vm9, %v1302_v62, %v1296_v61 }
 0x730   : > { %v1300_v1 = vpop.permute.xlu0 %1299 }
 0x731   : > { %v1306_v2 = vsel %vm1305_vm10, %v1304_v63, %v1300_v1 }
 0x732   : > { %v1307_v3 = vpack.c.bf16 %v1306_v2, %v1306_v2 }
 0x734   : > { %1959 = vmatmul.mubr.msk.bf16.vlgmr.msra.gmra.mrb[28].mxu1 %vm558_vm0, %v1307_v3 }
 0x735   : > { %1974 = vmatprep.mubr.msk.bf16.mxu1 %vm2368_vm1, %v2367_v4  ;;  %1971 = vmatpush3.bf16.msra.mxu1 %v2102_v13 }
 0x736   : > { %1972 = vmatprep.subr.bf16.mxu1 %v2367_v4 }
 0x739   : > { %1973 = vmatpush3.bf16.msra.mxu1 %v2104_v14 }
 0x807   : > { %v1361_v5 = vpop.f32.mrb[28].mxu1 }
 0x808   : > { %v2777_v6 = vadd.f32 %v1361_v5, %v2631_v0  ;;  %v1960_v7 = vpop.f32.mrb[29].mxu1  ;;  %v2103_v0 = vld [vmem:[%s2919_s10 + $0x8] sm:$0xff]  }
 0x809   : > { %v1364_v8 = vpop.f32.mrb[30].mxu1  ;;  %1965 = vmatpush3.bf16.msra.mxu0 %v2103_v0 }
 0x80a   : > { %v1961_v9 = vpop.f32.mrb[31].mxu1  ;;  %v1368_v10 = vmul.f32 %v2777_v6, %v2777_v6  ;;  %1978 = vmatprep.subr.bf16.mxu0 %v2367_v4 }
 0x80c   : > { %v1369_v11 = vsel %vm558_vm0, %v1368_v10, 0.0 }
 0x80d   : > { %1370 = vadd.xlane.f32.xlu1 %v1369_v11 }
 0x89a   : > { %v1371_v15 = vpop.xlane.xlu1 %1370 }
 0x89b   : > { %v1372_v16 = vmul.f32 0.03125, %v1371_v15 }
 0x89d   : > { %v1373_v17 = vadd.f32 1.1920929e-07, %v1372_v16 }
 0x89f   : > { %2135 = vrsqrt.f32 %v1373_v17 }
 0x8a9   : > { %v2136_v18 = vpop.eup %2135 }
 0x8aa   : > { %v1375_v20 = vmul.f32 %v2136_v18, %v2777_v6 }
 0x8ac   : > { %v1382_v21 = vmul.f32 %v1817_v19, %v1375_v20 }
 0x8ae   : > { %v1383_v22 = vpack.c.bf16 %v1382_v21, %v1382_v21 }
 0x8b0   : > { %1967 = vmatmul.mubr.msk.bf16.vlgmr.msra.gmra.mrb[16].mxu0 %vm558_vm0, %v1383_v22  ;;  %1975 = vmatmul.mubr.msk.bf16.vlgmr.msra.gmra.mrb[32].mxu1 %vm558_vm0, %v1383_v22 }
 0x8b1   : > { %1994 = vmatprep.mubr.msk.bf16.mxu0 %vm2368_vm1, %v2367_v4  ;;  %1979 = vmatpush3.bf16.msra.mxu0 %v2105_v23 }
 0x8b2   : > { %1980 = vmatprep.subr.bf16.mxu0 %v2367_v4 }
 0x8b5   : > { %1981 = vmatpush3.bf16.msra.mxu0 %v2106_v24 }
 0x8b6   : > { %1982 = vmatprep.subr.bf16.mxu0 %v2367_v4 }
 0x8b9   : > { %1983 = vmatpush3.bf16.msra.mxu0 %v2107_v25 }
 0x8ba   : > { %1984 = vmatprep.subr.bf16.mxu0 %v2367_v4 }
 0x8bd   : > { %1985 = vmatpush3.bf16.msra.mxu0 %v2108_v26 }
 0x8be   : > { %1986 = vmatprep.subr.bf16.mxu0 %v2367_v4 }
 0x8c1   : > { %1987 = vmatpush3.bf16.msra.mxu0 %v2109_v27 }
 0x8c2   : > { %1988 = vmatprep.subr.bf16.mxu0 %v2367_v4 }
 0x8c5   : > { %1989 = vmatpush3.bf16.msra.mxu0 %v2110_v29 }
 0x8c6   : > { %1990 = vmatprep.subr.bf16.mxu0 %v2367_v4 }
 0x8c9   : > { %1991 = vmatpush3.bf16.msra.mxu0 %v2111_v28 }
 0x8ca   : > { %1992 = vmatprep.subr.bf16.mxu0 %v2367_v4 }
 0x8cd   : > { %1993 = vmatpush3.bf16.msra.mxu0 %v2112_v30 }
 0x983   : > { %v1437_v31 = vpop.f32.mrb[16].mxu0  ;;  %v1493_v32 = vpop.f32.mrb[32].mxu1 }
 0x984   : > { %v1824_v33 = vmul.f32 -1.442695, %v1437_v31  ;;  %v1968_v34 = vpop.f32.mrb[17].mxu0  ;;  %v1976_v35 = vpop.f32.mrb[33].mxu1 }
 0x985   : > { %v1440_v36 = vpop.f32.mrb[18].mxu0  ;;  %v1496_v37 = vpop.f32.mrb[34].mxu1 }
 0x986   : > { %2137 = vpow2.f32 %v1824_v33  ;;  %v1969_v38 = vpop.f32.mrb[19].mxu0  ;;  %v1977_v39 = vpop.f32.mrb[35].mxu1 }
 0x990   : > { %v2138_v4 = vpop.eup %2137 }
 0x991   : > { %v1502_v40 = vadd.f32 1.0, %v2138_v4 }
 0x993   : > { %2139 = vrcp.f32 %v1502_v40 }
 0x99d   : > { %v2140_v41 = vpop.eup %2139 }
 0x99e   : > { %v1505_v42 = vmul.f32 %v2140_v41, %v1437_v31 }
 0x9a0   : > { %v1506_v43 = vmul.f32 %v1505_v42, %v1493_v32 }
 0x9a2   : > { %v1507_v44 = vpack.c.bf16 %v1506_v43, %v1506_v43 }
 0x9a4   : > { %1995 = vmatmul.mubr.bf16.vlgmr.msra.gmra.mrb[20].mxu0 %v1507_v44 }
 0x9a5   : > { %2266 = shalt.err (!%p2263_p1)
}
 0x9a6   : > { %s2267_s28 = scalar_lea.hbm %s2836_s25, 128  ;;  %s2271_s18 = scalar_lea.hbm %s2962_s17, 256 }
 0x9a7   : > { %p2268_p0 = scmp.ne.s32.totalorder %s2836_s25, %s2267_s28  ;;  %p2272_p9 = scmp.lt.u32.totalorder %s2836_s25, %s2962_s17 }
 0x9a8   : > { %p2273_p12 = scmp.lt.u32.totalorder %s2271_s18, %s2267_s28  ;;  %p2275_p2 = scmp.lt.u32.totalorder %s2267_s28, %s2836_s25 }
 0x9a9   : > { %p2269_p6 = pnand %p2268_p0, %p2963_p3 }
 0x9aa   : > { %p2274_p10 = por %p2273_p12, %p2272_p9 }
 0x9ab   : > { %p2270_p5 = pneg %p2269_p6 }
 0x9ac   : > { %p2276_p4 = por %p2275_p2, %p2274_p10 }
 0x9ae   : > { %p2277_p7 = pnand %p2276_p4, %p2270_p5 }
 0x9b0   : > { %2280 = shalt.err (!%p2277_p7)
}
 0x9b1   : > { %2015 = dma.vmem_to_hbm [thread:$0]  (%p2963_p3), %s1646_s21, 128, %s2836_s25, %s1619_s29  }
 0x9b2   : > { %s2964_s20 = sshll.u32 %s2719_s15, 3  ;;  %s2965_s18 = sld [smem:[#allocation25_spill]] }
 0x9b3   : > { %s542_s16 = scalar_lea.vmem [#allocation10], %s2964_s20  ;;  %s1614_s25 = scalar_lea.sflag [#allocation4], %s2719_s15 }
 0x9b4   : > { %s1632_s27 = sshll.u32 %s542_s16, 4  ;;  %s2376_s22 = smov [#allocation10]   ;;  %s2867_s27 = int_to_ptr.vmem [resolvable:$true] %s1632_s27 }
 0x9b5   : > { %s2281_s21 = scalar_lea.vmem %s2867_s27, 128  ;;  %s2285_s29 = sshll.u32 %s2376_s22, 4  ;;  %s2286_s29 = int_to_ptr.vmem [resolvable:$false] %s2285_s29 }
 0x9b6   : > { %p2282_p8 = scmp.ne.s32.totalorder %s2867_s27, %s2281_s21  ;;  %p2288_p1 = scmp.lt.s32.totalorder %s2867_s27, %s2286_s29 }
 0x9b8   : > { %s2966_s30 = smov %s2965_s18  ;;  %s2865_s26 = scalar_lea.hbm %s2965_s18, %s1835_s14 }
 0x9b9   : > { %p2283_p11 = pnand %p2282_p8, %p2963_p3  ;;  %s2287_s14 = scalar_lea.vmem %s2286_s29, 256 }
 0x9ba   : > { %p2289_p0 = scmp.lt.s32.totalorder %s2287_s14, %s2281_s21 }
 0x9bb   : > { %p2284_p13 = pneg %p2283_p11 }
 0x9bc   : > { %p2290_p6 = por %p2289_p0, %p2288_p1 }
 0x9be   : > { %p2291_p5 = pnand %p2290_p6, %p2284_p13 }
 0xa77   : > { %v1606_v45 = vpop.f32.mrb[20].mxu0 }
 0xa78   : > { %v1607_v46 = vadd.f32 %v1606_v45, %v2777_v6  ;;  %v1996_v47 = vpop.f32.mrb[21].mxu0 }
 0xa79   : > { %v1609_v48 = vpop.f32.mrb[22].mxu0 }
 0xa7a   : > { %v1997_v49 = vpop.f32.mrb[23].mxu0  ;;  %1612 = vst.msk [vmem:[%s542_s16] sm:$0xff] %vm558_vm0, %v1607_v46 }
 0xa7b   : > { %2294 = shalt.err (!%p2291_p5)
}
 0xa7c   : > { %s2295_s15 = scalar_lea.hbm %s2865_s26, 128  ;;  %s2299_s28 = scalar_lea.hbm %s2966_s30, 256 }
 0xa7d   : > { %p2296_p9 = scmp.ne.s32.totalorder %s2865_s26, %s2295_s15  ;;  %p2300_p2 = scmp.lt.u32.totalorder %s2865_s26, %s2966_s30 }
 0xa7e   : > { %p2301_p4 = scmp.lt.u32.totalorder %s2299_s28, %s2295_s15  ;;  %p2303_p8 = scmp.lt.u32.totalorder %s2295_s15, %s2865_s26 }
 0xa7f   : > { %p2297_p12 = pnand %p2296_p9, %p2963_p3 }
 0xa80   : > { %p2302_p7 = por %p2301_p4, %p2300_p2 }
 0xa81   : > { %p2298_p10 = pneg %p2297_p12 }
 0xa82   : > { %p2304_p11 = por %p2303_p8, %p2302_p7 }
 0xa84   : > { %p2305_p13 = pnand %p2304_p11, %p2298_p10 }
 0xa86   : > { %2308 = shalt.err (!%p2305_p13)
}
 0xa87   : > { %2014 = dma.vmem_to_hbm [thread:$0]  (%p2963_p3), %s2867_s27, 128, %s2865_s26, %s1614_s25  }
 0xa88 PF: > { %s2967_s21 = sld [smem:[#allocation20_spill]]  ;;  %s2968_s22 = sld [smem:[#allocation18_spill]] }
 0xa89   : > { %s2969_s29 = sld [smem:[#allocation24_spill]] }
 0xa8e   : > { %p2046_p1 = scmp.ge.s32.totalorder %s2967_s21, 2  ;;  %s1657_s14 = sand.u32 1, %s2968_s22  }
 0xa8f   : > { %p2970_p0 = scmp.ne.s32.totalorder %s2969_s29, 0  ;;  %s1658_s20 = scalar_lea.sflag [#allocation4], %s1657_s14 }
 0xa91   : > { %p2032_p6 = pnand %p2046_p1, %p2970_p0 }
 0xa93   : > { %2338 = dma.done.wait (!%p2032_p6), %s1658_s20, 128  }
 0xa94   : > { %2340 = vsyncadd (!%p2032_p6), %s1658_s20, 4294967168  ;;  %s1667_s15 = scalar_lea.sflag [#allocation12], %s1657_s14 }
 0xa95   : > { %2342 = dma.done.wait (!%p2032_p6), %s1667_s15, 128  }
 0xa96   : > { %2344 = vsyncadd (!%p2032_p6), %s1667_s15, 4294967168  ;;  %s2971_s21 = sld [smem:[#allocation21_spill]]  ;;  %s2972_s23 = sld [smem:[#allocation19_spill]] }
 0xa97   : > { %s2973_s20 = sld [smem:[#allocation22_spill]]  ;;  %s2974_s18 = smov %s2351_s19 }
 0xa9c   : > { %p32_p3 = scmp.ge.s32.totalorder %s2971_s21, 4   ;;  %s2975_s19 = smov %s2972_s23 }
 0xa9e   :  { %34 = sbr.rel (!%p32_p3) target bundleno = 11 (0xb), region = 145 }
 0xaa5   :  { %1672 = vsyncpa [#allocation3], 1 }
 0xaa6   :  { %1674 = vsyncpa [#allocation3 + $0x1], 1 }
 0xaa7   :  { %1675 = vsyncpa [#allocation6], 1 }
 0xaa8   :  { %1676 = vsyncpa [#allocation9], 1 }
 0xaa9   :  { %1677 = vsyncpa [#allocation4], 1 }
 0xaaa   :  { %1679 = vsyncpa [#allocation4 + $0x1], 1 }
 0xaab   :  { %1680 = vsyncpa [#allocation12], 1 }
 0xaac   :  { %1682 = vsyncpa [#allocation12 + $0x1], 1 }

</bundles_post_ra>
